<compile_context>
chip_gen: v5e
topology: v5e:2x2
jax: 0.10.0
libtpu: 0.0.40
codegen_flags: <defaults>
</compile_context>

<pallas_src>
import functools

import jax
import jax.numpy as jnp
from jax import lax
from jax.experimental import pallas as pl
from jax.experimental.pallas import tpu as pltpu


def _round_up(x, m):
    return (x + m - 1) // m * m


def _ffnnc_kernel(x_ref, w1_ref, w2_ref, w3_ref, w4_ref, bpack_ref, b5_ref,
                  o_ref, *, sub_b, n_sub, compute_dtype, precision):
    # x_ref   : (block_b, in_size)  -- natural [rows, features] layout
    # w*_ref  : PyTorch [out, in] layout, compute_dtype
    # bpack_ref: (hidden, 8) f32 = [b1 b2 b3 b4 w5 0 0 0] columns
    # b5_ref  : (1, 1) f32 scalar in SMEM
    # o_ref   : (1, block_b) f32 -- batch on the lane axis (lane-dense stores)
    b5 = b5_ref[0, 0]

    def sub_chunk(s, carry):
        off = pl.multiple_of(s * sub_b, sub_b)
        # Feature axis contracted directly -- no physical transpose of x anywhere.
        xs = x_ref[pl.ds(off, sub_b), :].astype(compute_dtype)      # (sub_b, in)
        h = lax.dot_general(w1_ref[...], xs,
                            dimension_numbers=(((1,), (1,)), ((), ())),
                            preferred_element_type=jnp.float32,
                            precision=precision)                    # (hidden, sub_b) f32 acc
        h = jnp.maximum(h.astype(compute_dtype)
                        + bpack_ref[:, 0:1].astype(compute_dtype), 0)
        for col, w_ref in ((1, w2_ref), (2, w3_ref), (3, w4_ref)):
            h = jnp.dot(w_ref[...], h,
                        preferred_element_type=jnp.float32,
                        precision=precision)
            h = jnp.maximum(h.astype(compute_dtype)
                            + bpack_ref[:, col:col + 1].astype(compute_dtype), 0)
        # Layer 5 (hidden -> 1): f32 VPU multiply + sublane (XLU) reduction;
        # result is already lane-dense (1, sub_b).
        w5 = bpack_ref[:, 4:5]                                        # (hidden, 1) f32
        logit = jnp.sum(h.astype(jnp.float32) * w5, axis=0, keepdims=True) + b5
        o_ref[:, pl.ds(off, sub_b)] = jax.nn.sigmoid(logit).astype(o_ref.dtype)
        return carry

    # Inner lane-chunking bounds vreg live ranges while the big grid tile
    # amortizes per-step overhead.
    lax.fori_loop(0, n_sub, sub_chunk, 0, unroll=(n_sub <= 8))


def ffnnc_forward(x, params, *, block_b=4096, sub_b=512,
                  compute_dtype=jnp.bfloat16, vmem_limit_bytes=None):
    """x: [B, input_size] float32 -> [B, 1] float32 (class-1 probability)."""
    (w1, b1), (w2, b2), (w3, b3), (w4, b4), (w5, b5) = params
    B, in_size = x.shape
    hidden = w1.shape[0]

    # --- batch tiling -----------------------------------------------------
    sub_b = _round_up(max(int(sub_b), 128), 128)           # lane-aligned inner chunk
    block_b = _round_up(max(int(block_b), sub_b), sub_b)   # grid tile, multiple of sub_b
    block_b = min(block_b, _round_up(B, sub_b))            # don't exceed padded batch
    n_tiles = -(-B // block_b)
    if n_tiles < 2 and B > sub_b:
        # Keep >= 2 grid tiles so the batch axis can shard across TensorCores (v7x).
        block_b = max(sub_b, _round_up(-(-B // 2), sub_b))
        n_tiles = -(-B // block_b)
    b_pad = n_tiles * block_b
    n_sub = block_b // sub_b

    f32_exact = jnp.dtype(compute_dtype) == jnp.dtype(jnp.float32)
    precision = lax.Precision.HIGHEST if f32_exact else None

    # Tiny one-time casts of the weights to the streaming dtype (no big HBM pass).
    w1c, w2c, w3c, w4c = (w.astype(compute_dtype) for w in (w1, w2, w3, w4))
    # Pack b1..b4 and W5 into one lane-padded f32 operand: one DMA stream instead
    # of five separate (hidden, 1) inputs.
    bpack = jnp.concatenate(
        [b1, b2, b3, b4, w5, jnp.zeros((hidden, 3), jnp.float32)], axis=1)

    # --- explicit VMEM budget (v5e default scoped limit is only 16 MiB) ----
    if vmem_limit_bytes is None:
        itemsize = jnp.dtype(compute_dtype).itemsize
        x_tile = block_b * in_size * x.dtype.itemsize
        out_tile = block_b * 4
        w_bytes = (in_size * hidden + 3 * hidden * hidden) * itemsize + hidden * 8 * 4
        # x / out / weights are double-buffered by default; generous headroom for
        # (8,128) tile padding and activation temporaries.
        vmem_limit_bytes = max(2 * (x_tile + out_tile + w_bytes) + (8 << 20),
                               32 << 20)
        vmem_limit_bytes = min(vmem_limit_bytes, 128 << 20)

    rep = lambda i: (0, 0)  # weights / biases replicated across batch tiles

    kernel = functools.partial(_ffnnc_kernel, sub_b=sub_b, n_sub=n_sub,
                               compute_dtype=compute_dtype, precision=precision)

    grid_spec = pltpu.PrefetchScalarGridSpec(
        num_scalar_prefetch=0,
        grid=(n_tiles,),
        in_specs=[
            pl.BlockSpec((block_b, in_size), lambda i: (i, 0)),   # x, natural layout
            pl.BlockSpec((hidden, in_size), rep),                 # W1 [out, in]
            pl.BlockSpec((hidden, hidden), rep),                  # W2
            pl.BlockSpec((hidden, hidden), rep),                  # W3
            pl.BlockSpec((hidden, hidden), rep),                  # W4
            pl.BlockSpec((hidden, 8), rep),                       # [b1 b2 b3 b4 w5 0 0 0]
            pl.BlockSpec(memory_space=pltpu.MemorySpace.SMEM),    # b5 scalar
        ],
        out_specs=pl.BlockSpec((1, block_b), lambda i: (0, i)),   # lane-dense output
    )

    out = pl.pallas_call(
        kernel,
        out_shape=jax.ShapeDtypeStruct((1, b_pad), jnp.float32),
        grid_spec=grid_spec,
        compiler_params=pltpu.CompilerParams(
            dimension_semantics=("parallel",),
            vmem_limit_bytes=vmem_limit_bytes),
    )(x, w1c, w2c, w3c, w4c, bpack, b5)

    # Drop batch padding, return [B, 1] like the PyTorch module.
    return out[0, :B].reshape(B, 1)


def init_params(key, input_size, hidden_size):
    """Deterministic init mimicking nn.Linear (uniform +-1/sqrt(fan_in)).
    W1..W4 stored in PyTorch layout [out, in]; biases as [out, 1];
    W5 stored transposed as [hidden, 1]; b5 as [1, 1]."""
    def linear(k, fan_in, fan_out):
        kw, kb = jax.random.split(k)
        bound = 1.0 / jnp.sqrt(fan_in)
        w = jax.random.uniform(kw, (fan_out, fan_in), jnp.float32, -bound, bound)
        b = jax.random.uniform(kb, (fan_out, 1), jnp.float32, -bound, bound)
        return w, b

    ks = jax.random.split(key, 5)
    p1 = linear(ks[0], input_size, hidden_size)
    p2 = linear(ks[1], hidden_size, hidden_size)
    p3 = linear(ks[2], hidden_size, hidden_size)
    p4 = linear(ks[3], hidden_size, hidden_size)
    w5, b5 = linear(ks[4], hidden_size, 1)
    return (p1, p2, p3, p4, (w5.T, b5))   # w5: [hidden, 1], b5: [1, 1]


def _reference(x, params):
    (w1, b1), (w2, b2), (w3, b3), (w4, b4), (w5, b5) = params
    hp = lax.Precision.HIGHEST
    h = x
    for w, b in ((w1, b1), (w2, b2), (w3, b3), (w4, b4)):
        h = jax.nn.relu(jnp.dot(h, w.T, precision=hp) + b[:, 0])
    return jax.nn.sigmoid(jnp.dot(h, w5, precision=hp) + b5[0, 0])   # [B, 1]


if __name__ == "__main__":
    key = jax.random.PRNGKey(0)
    input_size, hidden_size, batch = 16, 32, 300   # ragged batch -> exercises edge tiles

    kx, kp = jax.random.split(key)
    x = jax.random.normal(kx, (batch, input_size), dtype=jnp.float32)
    params = init_params(kp, input_size, hidden_size)

    ref = _reference(x, params)

    # f32 exact path, small tiles -> 2 grid tiles, 2 inner sub-chunks, ragged tail.
    out = ffnnc_forward(x, params, block_b=256, sub_b=128,
                        compute_dtype=jnp.float32)
    out = jax.block_until_ready(out)
    assert out.shape == (batch, 1)
    assert jnp.allclose(out, ref, atol=1e-5, rtol=1e-5), "f32 mismatch vs reference"

    # Default perf config: large lane-dense tiles, bf16 MXU streaming, f32 accumulation.
    out_bf16 = jax.block_until_ready(ffnnc_forward(x, params))
    assert out_bf16.shape == (batch, 1)
    assert jnp.allclose(out_bf16, ref, atol=3e-2, rtol=3e-2), "bf16 mismatch vs reference"

    print("KERNEL_OK")
</pallas_src>

<mosaic_0001>
module attributes {stable_mosaic.version = 11 : i64} {
  func.func @_ffnnc_kernel(%arg0: i32, %arg1: memref<256x16xf32, #tpu.memory_space<vmem>>, %arg2: memref<32x16xf32, #tpu.memory_space<vmem>>, %arg3: memref<32x32xf32, #tpu.memory_space<vmem>>, %arg4: memref<32x32xf32, #tpu.memory_space<vmem>>, %arg5: memref<32x32xf32, #tpu.memory_space<vmem>>, %arg6: memref<32x8xf32, #tpu.memory_space<vmem>>, %arg7: memref<1x1xf32, #tpu.memory_space<smem>>, %arg8: memref<1x256xf32, #tpu.memory_space<vmem>>) attributes {dimension_semantics = [#tpu.dimension_semantics<parallel>], iteration_bounds = array<i64: 2>, scalar_prefetch = 0 : i64, scratch_operands = 0 : i64, tpu.core_type = #tpu.core_type<tc>, window_params = [{transform_indices = @transform_0, window_bounds = array<i64: 256, 16>}, {pipeline_mode = #tpu.pipeline_mode<synchronous>, transform_indices = @transform_1, window_bounds = array<i64: 32, 16>}, {pipeline_mode = #tpu.pipeline_mode<synchronous>, transform_indices = @transform_2, window_bounds = array<i64: 32, 32>}, {pipeline_mode = #tpu.pipeline_mode<synchronous>, transform_indices = @transform_3, window_bounds = array<i64: 32, 32>}, {pipeline_mode = #tpu.pipeline_mode<synchronous>, transform_indices = @transform_4, window_bounds = array<i64: 32, 32>}, {pipeline_mode = #tpu.pipeline_mode<synchronous>, transform_indices = @transform_5, window_bounds = array<i64: 32, 8>}, {transform_indices = @transform_6, window_bounds = array<i64: 1, 1>}, {transform_indices = @transform_7, window_bounds = array<i64: 1, 256>}]} {
    %c0 = arith.constant 0 : index
    %c0_0 = arith.constant 0 : index
    %0 = memref.load %arg7[%c0, %c0_0] : memref<1x1xf32, #tpu.memory_space<smem>>
    %c0_i32 = arith.constant 0 : i32
    %c128_i32 = arith.constant 128 : i32
    %1 = arith.muli %c0_i32, %c128_i32 : i32
    %2 = tpu.assume_multiple %1, 128 : i32
    %3 = arith.index_cast %2 : i32 to index
    %c0_1 = arith.constant 0 : index
    %4 = vector.load %arg1[%3, %c0_1] : memref<256x16xf32, #tpu.memory_space<vmem>>, vector<128x16xf32>
    %c0_2 = arith.constant 0 : index
    %c0_3 = arith.constant 0 : index
    %5 = vector.load %arg2[%c0_2, %c0_3] : memref<32x16xf32, #tpu.memory_space<vmem>>, vector<32x16xf32>
    %cst = arith.constant dense<0.000000e+00> : vector<32x128xf32>
    %6 = tpu.matmul %5, %4, %cst {dimension_numbers = #tpu.dot_dimension_numbers<[1], [1], [0], [0], [0, 0, 1, 0], [], []>, precision = #tpu.contract_precision<fp32>} : vector<32x16xf32>, vector<128x16xf32>, vector<32x128xf32> -> vector<32x128xf32>
    %c0_4 = arith.constant 0 : index
    %c0_5 = arith.constant 0 : index
    %7 = vector.load %arg6[%c0_4, %c0_5] : memref<32x8xf32, #tpu.memory_space<vmem>>, vector<32x1xf32>
    %8 = vector.broadcast %7 : vector<32x1xf32> to vector<32x128xf32>
    %9 = arith.addf %6, %8 : vector<32x128xf32>
    %cst_6 = arith.constant 0.000000e+00 : f32
    %10 = vector.broadcast %cst_6 : f32 to vector<32x128xf32>
    %11 = arith.maximumf %9, %10 : vector<32x128xf32>
    %c0_7 = arith.constant 0 : index
    %c0_8 = arith.constant 0 : index
    %12 = vector.load %arg3[%c0_7, %c0_8] : memref<32x32xf32, #tpu.memory_space<vmem>>, vector<32x32xf32>
    %cst_9 = arith.constant dense<0.000000e+00> : vector<32x128xf32>
    %13 = tpu.matmul %12, %11, %cst_9 {dimension_numbers = #tpu.dot_dimension_numbers<[1], [0], [0], [1], [0, 0, 1, 1], [], []>, precision = #tpu.contract_precision<fp32>} : vector<32x32xf32>, vector<32x128xf32>, vector<32x128xf32> -> vector<32x128xf32>
    %c0_10 = arith.constant 0 : index
    %c1 = arith.constant 1 : index
    %14 = vector.load %arg6[%c0_10, %c1] : memref<32x8xf32, #tpu.memory_space<vmem>>, vector<32x1xf32>
    %15 = vector.broadcast %14 : vector<32x1xf32> to vector<32x128xf32>
    %16 = arith.addf %13, %15 : vector<32x128xf32>
    %cst_11 = arith.constant 0.000000e+00 : f32
    %17 = vector.broadcast %cst_11 : f32 to vector<32x128xf32>
    %18 = arith.maximumf %16, %17 : vector<32x128xf32>
    %c0_12 = arith.constant 0 : index
    %c0_13 = arith.constant 0 : index
    %19 = vector.load %arg4[%c0_12, %c0_13] : memref<32x32xf32, #tpu.memory_space<vmem>>, vector<32x32xf32>
    %cst_14 = arith.constant dense<0.000000e+00> : vector<32x128xf32>
    %20 = tpu.matmul %19, %18, %cst_14 {dimension_numbers = #tpu.dot_dimension_numbers<[1], [0], [0], [1], [0, 0, 1, 1], [], []>, precision = #tpu.contract_precision<fp32>} : vector<32x32xf32>, vector<32x128xf32>, vector<32x128xf32> -> vector<32x128xf32>
    %c0_15 = arith.constant 0 : index
    %c2 = arith.constant 2 : index
    %21 = vector.load %arg6[%c0_15, %c2] : memref<32x8xf32, #tpu.memory_space<vmem>>, vector<32x1xf32>
    %22 = vector.broadcast %21 : vector<32x1xf32> to vector<32x128xf32>
    %23 = arith.addf %20, %22 : vector<32x128xf32>
    %cst_16 = arith.constant 0.000000e+00 : f32
    %24 = vector.broadcast %cst_16 : f32 to vector<32x128xf32>
    %25 = arith.maximumf %23, %24 : vector<32x128xf32>
    %c0_17 = arith.constant 0 : index
    %c0_18 = arith.constant 0 : index
    %26 = vector.load %arg5[%c0_17, %c0_18] : memref<32x32xf32, #tpu.memory_space<vmem>>, vector<32x32xf32>
    %cst_19 = arith.constant dense<0.000000e+00> : vector<32x128xf32>
    %27 = tpu.matmul %26, %25, %cst_19 {dimension_numbers = #tpu.dot_dimension_numbers<[1], [0], [0], [1], [0, 0, 1, 1], [], []>, precision = #tpu.contract_precision<fp32>} : vector<32x32xf32>, vector<32x128xf32>, vector<32x128xf32> -> vector<32x128xf32>
    %c0_20 = arith.constant 0 : index
    %c3 = arith.constant 3 : index
    %28 = vector.load %arg6[%c0_20, %c3] : memref<32x8xf32, #tpu.memory_space<vmem>>, vector<32x1xf32>
    %29 = vector.broadcast %28 : vector<32x1xf32> to vector<32x128xf32>
    %30 = arith.addf %27, %29 : vector<32x128xf32>
    %cst_21 = arith.constant 0.000000e+00 : f32
    %31 = vector.broadcast %cst_21 : f32 to vector<32x128xf32>
    %32 = arith.maximumf %30, %31 : vector<32x128xf32>
    %c0_22 = arith.constant 0 : index
    %c4 = arith.constant 4 : index
    %33 = vector.load %arg6[%c0_22, %c4] : memref<32x8xf32, #tpu.memory_space<vmem>>, vector<32x1xf32>
    %34 = vector.broadcast %33 : vector<32x1xf32> to vector<32x128xf32>
    %35 = arith.mulf %32, %34 : vector<32x128xf32>
    %cst_23 = arith.constant dense<0.000000e+00> : vector<128xf32>
    %36 = vector.multi_reduction <add>, %35, %cst_23 [0] : vector<32x128xf32> to vector<128xf32>
    %37 = vector.shape_cast %36 : vector<128xf32> to vector<1x128xf32>
    %38 = vector.broadcast %0 : f32 to vector<1x128xf32>
    %39 = arith.addf %37, %38 : vector<1x128xf32>
    %40 = arith.negf %39 : vector<1x128xf32>
    %41 = math.exp %40 : vector<1x128xf32>
    %cst_24 = arith.constant 1.000000e+00 : f32
    %42 = vector.broadcast %cst_24 : f32 to vector<1x128xf32>
    %43 = arith.addf %42, %41 : vector<1x128xf32>
    %44 = arith.divf %42, %43 : vector<1x128xf32>
    %c0_25 = arith.constant 0 : index
    %45 = arith.index_cast %2 : i32 to index
    %46 = vector.load %arg8[%c0_25, %45] : memref<1x256xf32, #tpu.memory_space<vmem>>, vector<1x128xf32>
    tpu.vector_store %arg8[%c0_25, %45], %44 {strides = array<i32>} : memref<1x256xf32, #tpu.memory_space<vmem>>, vector<1x128xf32>,
    %c1_i32 = arith.constant 1 : i32
    %c128_i32_26 = arith.constant 128 : i32
    %47 = arith.muli %c1_i32, %c128_i32_26 : i32
    %48 = tpu.assume_multiple %47, 128 : i32
    %49 = arith.index_cast %48 : i32 to index
    %c0_27 = arith.constant 0 : index
    %50 = vector.load %arg1[%49, %c0_27] : memref<256x16xf32, #tpu.memory_space<vmem>>, vector<128x16xf32>
    %c0_28 = arith.constant 0 : index
    %c0_29 = arith.constant 0 : index
    %51 = vector.load %arg2[%c0_28, %c0_29] : memref<32x16xf32, #tpu.memory_space<vmem>>, vector<32x16xf32>
    %cst_30 = arith.constant dense<0.000000e+00> : vector<32x128xf32>
    %52 = tpu.matmul %51, %50, %cst_30 {dimension_numbers = #tpu.dot_dimension_numbers<[1], [1], [0], [0], [0, 0, 1, 0], [], []>, precision = #tpu.contract_precision<fp32>} : vector<32x16xf32>, vector<128x16xf32>, vector<32x128xf32> -> vector<32x128xf32>
    %c0_31 = arith.constant 0 : index
    %c0_32 = arith.constant 0 : index
    %53 = vector.load %arg6[%c0_31, %c0_32] : memref<32x8xf32, #tpu.memory_space<vmem>>, vector<32x1xf32>
    %54 = vector.broadcast %53 : vector<32x1xf32> to vector<32x128xf32>
    %55 = arith.addf %52, %54 : vector<32x128xf32>
    %cst_33 = arith.constant 0.000000e+00 : f32
    %56 = vector.broadcast %cst_33 : f32 to vector<32x128xf32>
    %57 = arith.maximumf %55, %56 : vector<32x128xf32>
    %c0_34 = arith.constant 0 : index
    %c0_35 = arith.constant 0 : index
    %58 = vector.load %arg3[%c0_34, %c0_35] : memref<32x32xf32, #tpu.memory_space<vmem>>, vector<32x32xf32>
    %cst_36 = arith.constant dense<0.000000e+00> : vector<32x128xf32>
    %59 = tpu.matmul %58, %57, %cst_36 {dimension_numbers = #tpu.dot_dimension_numbers<[1], [0], [0], [1], [0, 0, 1, 1], [], []>, precision = #tpu.contract_precision<fp32>} : vector<32x32xf32>, vector<32x128xf32>, vector<32x128xf32> -> vector<32x128xf32>
    %c0_37 = arith.constant 0 : index
    %c1_38 = arith.constant 1 : index
    %60 = vector.load %arg6[%c0_37, %c1_38] : memref<32x8xf32, #tpu.memory_space<vmem>>, vector<32x1xf32>
    %61 = vector.broadcast %60 : vector<32x1xf32> to vector<32x128xf32>
    %62 = arith.addf %59, %61 : vector<32x128xf32>
    %cst_39 = arith.constant 0.000000e+00 : f32
    %63 = vector.broadcast %cst_39 : f32 to vector<32x128xf32>
    %64 = arith.maximumf %62, %63 : vector<32x128xf32>
    %c0_40 = arith.constant 0 : index
    %c0_41 = arith.constant 0 : index
    %65 = vector.load %arg4[%c0_40, %c0_41] : memref<32x32xf32, #tpu.memory_space<vmem>>, vector<32x32xf32>
    %cst_42 = arith.constant dense<0.000000e+00> : vector<32x128xf32>
    %66 = tpu.matmul %65, %64, %cst_42 {dimension_numbers = #tpu.dot_dimension_numbers<[1], [0], [0], [1], [0, 0, 1, 1], [], []>, precision = #tpu.contract_precision<fp32>} : vector<32x32xf32>, vector<32x128xf32>, vector<32x128xf32> -> vector<32x128xf32>
    %c0_43 = arith.constant 0 : index
    %c2_44 = arith.constant 2 : index
    %67 = vector.load %arg6[%c0_43, %c2_44] : memref<32x8xf32, #tpu.memory_space<vmem>>, vector<32x1xf32>
    %68 = vector.broadcast %67 : vector<32x1xf32> to vector<32x128xf32>
    %69 = arith.addf %66, %68 : vector<32x128xf32>
    %cst_45 = arith.constant 0.000000e+00 : f32
    %70 = vector.broadcast %cst_45 : f32 to vector<32x128xf32>
    %71 = arith.maximumf %69, %70 : vector<32x128xf32>
    %c0_46 = arith.constant 0 : index
    %c0_47 = arith.constant 0 : index
    %72 = vector.load %arg5[%c0_46, %c0_47] : memref<32x32xf32, #tpu.memory_space<vmem>>, vector<32x32xf32>
    %cst_48 = arith.constant dense<0.000000e+00> : vector<32x128xf32>
    %73 = tpu.matmul %72, %71, %cst_48 {dimension_numbers = #tpu.dot_dimension_numbers<[1], [0], [0], [1], [0, 0, 1, 1], [], []>, precision = #tpu.contract_precision<fp32>} : vector<32x32xf32>, vector<32x128xf32>, vector<32x128xf32> -> vector<32x128xf32>
    %c0_49 = arith.constant 0 : index
    %c3_50 = arith.constant 3 : index
    %74 = vector.load %arg6[%c0_49, %c3_50] : memref<32x8xf32, #tpu.memory_space<vmem>>, vector<32x1xf32>
    %75 = vector.broadcast %74 : vector<32x1xf32> to vector<32x128xf32>
    %76 = arith.addf %73, %75 : vector<32x128xf32>
    %cst_51 = arith.constant 0.000000e+00 : f32
    %77 = vector.broadcast %cst_51 : f32 to vector<32x128xf32>
    %78 = arith.maximumf %76, %77 : vector<32x128xf32>
    %c0_52 = arith.constant 0 : index
    %c4_53 = arith.constant 4 : index
    %79 = vector.load %arg6[%c0_52, %c4_53] : memref<32x8xf32, #tpu.memory_space<vmem>>, vector<32x1xf32>
    %80 = vector.broadcast %79 : vector<32x1xf32> to vector<32x128xf32>
    %81 = arith.mulf %78, %80 : vector<32x128xf32>
    %cst_54 = arith.constant dense<0.000000e+00> : vector<128xf32>
    %82 = vector.multi_reduction <add>, %81, %cst_54 [0] : vector<32x128xf32> to vector<128xf32>
    %83 = vector.shape_cast %82 : vector<128xf32> to vector<1x128xf32>
    %84 = vector.broadcast %0 : f32 to vector<1x128xf32>
    %85 = arith.addf %83, %84 : vector<1x128xf32>
    %86 = arith.negf %85 : vector<1x128xf32>
    %87 = math.exp %86 : vector<1x128xf32>
    %cst_55 = arith.constant 1.000000e+00 : f32
    %88 = vector.broadcast %cst_55 : f32 to vector<1x128xf32>
    %89 = arith.addf %88, %87 : vector<1x128xf32>
    %90 = arith.divf %88, %89 : vector<1x128xf32>
    %c0_56 = arith.constant 0 : index
    %91 = arith.index_cast %48 : i32 to index
    %92 = vector.load %arg8[%c0_56, %91] : memref<1x256xf32, #tpu.memory_space<vmem>>, vector<1x128xf32>
    tpu.vector_store %arg8[%c0_56, %91], %90 {strides = array<i32>} : memref<1x256xf32, #tpu.memory_space<vmem>>, vector<1x128xf32>,
    %c2_i32 = arith.constant 2 : i32
    return
  }
  func.func @transform_0(%arg0: i32) -> (i32, i32) {
    %c0_i32 = arith.constant 0 : i32
    %c0_i32_0 = arith.constant 0 : i32
    return %arg0, %c0_i32 : i32, i32
  }
  func.func @transform_1(%arg0: i32) -> (i32, i32) {
    %c0_i32 = arith.constant 0 : i32
    %c0_i32_0 = arith.constant 0 : i32
    %c0_i32_1 = arith.constant 0 : i32
    return %c0_i32, %c0_i32_0 : i32, i32
  }
  func.func @transform_2(%arg0: i32) -> (i32, i32) {
    %c0_i32 = arith.constant 0 : i32
    %c0_i32_0 = arith.constant 0 : i32
    %c0_i32_1 = arith.constant 0 : i32
    return %c0_i32, %c0_i32_0 : i32, i32
  }
  func.func @transform_3(%arg0: i32) -> (i32, i32) {
    %c0_i32 = arith.constant 0 : i32
    %c0_i32_0 = arith.constant 0 : i32
    %c0_i32_1 = arith.constant 0 : i32
    return %c0_i32, %c0_i32_0 : i32, i32
  }
  func.func @transform_4(%arg0: i32) -> (i32, i32) {
    %c0_i32 = arith.constant 0 : i32
    %c0_i32_0 = arith.constant 0 : i32
    %c0_i32_1 = arith.constant 0 : i32
    return %c0_i32, %c0_i32_0 : i32, i32
  }
  func.func @transform_5(%arg0: i32) -> (i32, i32) {
    %c0_i32 = arith.constant 0 : i32
    %c0_i32_0 = arith.constant 0 : i32
    %c0_i32_1 = arith.constant 0 : i32
    return %c0_i32, %c0_i32_0 : i32, i32
  }
  func.func @transform_6(%arg0: i32) -> (i32, i32) {
    %c0_i32 = arith.constant 0 : i32
    %c0_i32_0 = arith.constant 0 : i32
    %c0_i32_1 = arith.constant 0 : i32
    return %c0_i32, %c0_i32_0 : i32, i32
  }
  func.func @transform_7(%arg0: i32) -> (i32, i32) {
    %c0_i32 = arith.constant 0 : i32
    %c0_i32_0 = arith.constant 0 : i32
    return %c0_i32, %arg0 : i32, i32
  }
}

</mosaic_0001>

<bundles_post_ra>
// kernel: tpu_custom_call.1
= control target key start
LH: loop header
LB: loop body
LE: loop exit
PB: predicated region body
PF: predicated region fallthrough
CT: control target
= control target key end

     0   :  { %s4953_s0 = inlined_call_operand.vmem [shape: f32[300,16], index: 0, kind: input, shape index: {}]   ;;  %s4954_s1 = inlined_call_operand.vmem [shape: f32[32,16], index: 1, kind: input, shape index: {}]   ;;  %s4955_s2 = inlined_call_operand.vmem [shape: f32[32,32], index: 2, kind: input, shape index: {}]   ;;  %s4956_s3 = inlined_call_operand.vmem [shape: f32[32,32], index: 3, kind: input, shape index: {}]   ;;  %s4957_s4 = inlined_call_operand.vmem [shape: f32[32,32], index: 4, kind: input, shape index: {}]   ;;  %s4958_s5 = inlined_call_operand.vmem [shape: f32[32,8], index: 5, kind: input, shape index: {}]   ;;  %s4959_s6 = inlined_call_operand.<no memory space> [shape: f32[1,1], index: 6, kind: input, shape index: {}]   ;;  %s4960_s7 = inlined_call_operand.hbm [shape: f32[1,512], index: 7, kind: output, shape index: {}]  }
   0x1   :  { %12 = sst [smem:[#allocation2]] %s4959_s6 }
   0x2   :  { %13 = vsyncpa [#allocation4], 0 }
   0x3   :  { %15 = vsyncpa [#allocation4 + $0x1], 0  ;;  %s3674_s26 = smov 0   ;;  %s3676_s27 = smov 0  }
   0x4   :  { %s3678_s28 = smov 0   ;;  %s3680_s29 = smov 0  }
   0x5 LB: > { %s3695_s6 = sadd.s32 4294967295, %s3624_s29   ;;  %s3454_s30 = sadd.s32 4294967294, %s3624_s29   ;;  %s3624_s29 = sphi %s3680_s29, %s4968_s29   ;;  %s3620_s28 = sphi %s3678_s28, %s4967_s28   ;;  %s3616_s27 = sphi %s3676_s27, %s4966_s27   ;;  %s3612_s26 = sphi %s3674_s26, %s4965_s26  }
   0x6   : > { %s3699_s8 = sadd.s32 1, %s3624_s29   ;;  %s180_s9 = sadd.s32 1, %s3620_s28 }
   0x7   : > { %s177_s10 = ssub.s32 %s3624_s29, %s3699_s8  ;;  %p190_p0 = scmp.ne.s32.totalorder %s3620_s28, %s3616_s27 }
   0x8   : > { %p178_p1 = scmp.eq.s32.totalorder %s177_s10, 0  ;;  %p191_p2 = scmp.eq.s32.totalorder %s3695_s6, 1 }
   0x9   : > { %p196_p3 = scmp.ne.s32.totalorder %s3616_s27, %s3612_s26  ;;  %p197_p4 = scmp.eq.s32.totalorder %s3454_s30, 1 }
   0xa   : > { %s3710_s11 = scalar_select %p178_p1, %s3620_s28, %s180_s9  }
   0xb   : > { %p3712_p5 = por %p191_p2, %p190_p0  ;;  %p3716_p6 = por %p197_p4, %p196_p3 }
   0xc   : > { %p3457_p7 = scmp.ge.s32.totalorder %s3624_s29, 1  ;;  %p250_p8 = scmp.lt.s32.totalorder %s3624_s29, 3 }
   0xe   : > { %p251_p9 = pnand %p3457_p7, %p250_p8 }
   0xf   : > { %s3459_s14 = sshll.u32 (!%p251_p9), %s3695_s6, 5  ;;  %s4723_s22 = sld [smem:[#allocation2]] (!%p251_p9) }
  0x10   : > { %254 = sbr.rel (%p251_p9) target bundleno = 1710 (0x6ae), region = 48  ;;  %p291_p10 = scmp.lt.s32.totalorder (!%p251_p9), %s3459_s14, 37 }
  0x11   : > { %s283_s23 = sand.u32 (!%p251_p9), 1, %s3616_s27   ;;  %s3481_s25 = sshll.u32 (!%p251_p9), %s3695_s6, 1 }
  0x12   : > { %s3458_s24 = sshll.u32 (!%p251_p9), %s283_s23, 1  ;;  %s3390_s10 = scalar_lea.hbm (!%p251_p9), %s4960_s7, %s3481_s25 }
  0x13   : > { %s3380_s6 = scalar_lea.sflag (!%p251_p9), [#allocation4], %s283_s23  ;;  %s3582_s20 = scalar_lea.hbm (!%p251_p9), %s4960_s7, 4 }
  0x15   : > { %s4970_s14 = smov (!%p291_p10, %s3459_s14), 37  ;;  %vm346_vm0 = vcmask 130048   ;;  %vm865_vm1 = vcmask 261120  }
  0x16   : > { %s3460_s15 = sshll.u32 %s4970_s14, 3  ;;  %s3394_s14 = sshll.u32 %s3390_s10, 4  ;;  %s3395_s14 = int_to_ptr.hbm [resolvable:$true] %s3394_s14 }
  0x17   : > { %s3726_s18 = scalar_lea.vmem %s4953_s0, %s3460_s15  ;;  %s3576_s15 = sshra.s32 %s3395_s14, 4  ;;  %s3577_s15 = int_to_ptr.hbm [resolvable:$true] %s3576_s15 }
  0x18   : > { %v317_v0 = vld [vmem:[%s3726_s18 + $0x78] sm:$0xff]  ;;  %v316_v1 = vld [vmem:[%s3726_s18 + $0x70] sm:$0xff]  ;;  %v315_v2 = vld [vmem:[%s3726_s18 + $0x68] sm:$0xff]  ;;  %s3578_s16 = scalar_lea.hbm %s3577_s15, 2  ;;  %p3583_p0 = scmp.lt.s32.totalorder %s3577_s15, %s4960_s7 }
  0x19   : > { %v405_v3 = vsel %vm346_vm0, %v317_v0, 0  ;;  %v402_v4 = vsel %vm346_vm0, %v316_v1, 0  ;;  %v399_v5 = vsel %vm346_vm0, %v315_v2, 0  ;;  %v314_v6 = vld [vmem:[%s3726_s18 + $0x60] sm:$0xff]  ;;  %v313_v7 = vld [vmem:[%s3726_s18 + $0x58] sm:$0xff]  ;;  %v312_v17 = vld [vmem:[%s3726_s18 + $0x50] sm:$0xff]  ;;  %p3579_p11 = scmp.ne.s32.totalorder %s3577_s15, %s3578_s16  ;;  %p3584_p1 = scmp.lt.s32.totalorder %s3582_s20, %s3578_s16 }
  0x1a   : > { %v3736_v8 = vand.u32 4294901760, %v405_v3  ;;  %v3738_v9 = vand.u32 4294901760, %v402_v4  ;;  %v3740_v10 = vand.u32 4294901760, %v399_v5  ;;  %v396_v11 = vsel %vm346_vm0, %v314_v6, 0  ;;  %v311_v26 = vld [vmem:[%s3726_s18 + $0x48] sm:$0xff]  ;;  %v310_v34 = vld [vmem:[%s3726_s18 + $0x40] sm:$0xff] }
  0x1b   : > { %v3743_v12 = vand.u32 4294901760, %v396_v11  ;;  %v393_v15 = vsel %vm346_vm0, %v313_v7, 0  ;;  %v390_v21 = vsel %vm346_vm0, %v312_v17, 0  ;;  %v387_v29 = vsel %vm346_vm0, %v311_v26, 0  ;;  %v309_v41 = vld [vmem:[%s3726_s18 + $0x38] sm:$0xff]  ;;  %v308_v48 = vld [vmem:[%s3726_s18 + $0x30] sm:$0xff]  ;;  %p3580_p12 = pnand %p3579_p11, %p3712_p5  ;;  %p3585_p2 = por %p3584_p1, %p3583_p0 }
  0x1c   : > { %408 = vmatpush.xpose.msra.mxu0 %v3736_v8  ;;  %v3747_v13 = vsub.f32 %v405_v3, %v3736_v8  ;;  %v3750_v14 = vsub.f32 %v402_v4, %v3738_v9  ;;  %v3754_v16 = vsub.f32 %v399_v5, %v3740_v10  ;;  %655 = vmatpush.xpose.msra.mxu3 %v3736_v8  ;;  %v3761_v20 = vand.u32 4294901760, %v393_v15  ;;  %v307_v55 = vld [vmem:[%s3726_s18 + $0x28] sm:$0xff]  ;;  %v306_v62 = vld [vmem:[%s3726_s18 + $0x20] sm:$0xff]  ;;  %v305_v5 = vld [vmem:[%s3726_s18 + $0x18] sm:$0xff] }
  0x1d   : > { %v3773_v25 = vsub.f32 %v396_v11, %v3743_v12  ;;  %v3778_v28 = vand.u32 4294901760, %v390_v21  ;;  %v3792_v35 = vand.u32 4294901760, %v387_v29  ;;  %v384_v40 = vsel %vm346_vm0, %v310_v34, 0  ;;  %v303_v34 = vld [vmem:[%s3726_s18 + $0x8] sm:$0xff]  ;;  %p3581_p13 = pneg %p3580_p12 }
  0x1e   : > { %v474_v18 = vand.u32 4294901760, %v3747_v13  ;;  %v480_v19 = vand.u32 4294901760, %v3750_v14  ;;  %587 = vmatpush.xpose.msra.mxu2 %v3747_v13  ;;  %v486_v24 = vand.u32 4294901760, %v3754_v16  ;;  %v3787_v33 = vsub.f32 %v393_v15, %v3761_v20 }
  0x1f   : > { %v492_v32 = vand.u32 4294901760, %v3773_v25  ;;  %v3795_v36 = vsub.f32 %v390_v21, %v3778_v28  ;;  %v3806_v42 = vand.u32 4294901760, %v384_v40  ;;  %v381_v46 = vsel %vm346_vm0, %v309_v41, 0  ;;  %p3586_p3 = pnand %p3585_p2, %p3581_p13 }
  0x20   : > { %410 = vmatpush.xpose.msra.mxu0 %v3738_v9  ;;  %v475_v22 = vsub.f32 %v3747_v13, %v474_v18  ;;  %v481_v23 = vsub.f32 %v3750_v14, %v480_v19  ;;  %657 = vmatpush.xpose.msra.mxu3 %v3738_v9  ;;  %v487_v31 = vsub.f32 %v3754_v16, %v486_v24  ;;  %v498_v39 = vand.u32 4294901760, %v3787_v33  ;;  %v3976_v13 = vld [vmem:[%s4958_s5 + $0x8] sm:$0xff] }
  0x21   : > { %v493_v38 = vsub.f32 %v3773_v25, %v492_v32  ;;  %v504_v43 = vand.u32 4294901760, %v3795_v36  ;;  %v3815_v47 = vsub.f32 %v387_v29, %v3792_v35  ;;  %v3823_v50 = vand.u32 4294901760, %v381_v46 }
  0x22   : > { %v476_v27 = vand.u32 4294901760, %v475_v22  ;;  %590 = vmatpush.xpose.msra.mxu2 %v3750_v14  ;;  %v482_v30 = vand.u32 4294901760, %v481_v23  ;;  %v488_v37 = vand.u32 4294901760, %v487_v31  ;;  %v499_v45 = vsub.f32 %v3787_v33, %v498_v39  ;;  %v304_v22 = vld [vmem:[%s3726_s18 + $0x10] sm:$0xff] }
  0x23   : > { %v494_v44 = vand.u32 4294901760, %v493_v38  ;;  %v505_v49 = vsub.f32 %v3795_v36, %v504_v43  ;;  %v510_v52 = vand.u32 4294901760, %v3815_v47  ;;  %v378_v53 = vsel %vm346_vm0, %v308_v48, 0 }
  0x24   : > { %412 = vmatpush.xpose.msra.mxu0 %v3740_v10  ;;  %477 = vmatpush.xpose.msra.mxu1 %v476_v27  ;;  %v500_v51 = vand.u32 4294901760, %v499_v45  ;;  %v3829_v54 = vsub.f32 %v384_v40, %v3806_v42  ;;  %v3834_v56 = vand.u32 4294901760, %v378_v53  ;;  %v375_v57 = vsel %vm346_vm0, %v307_v55, 0 }
  0x25   : > { %659 = vmatpush.xpose.msra.mxu3 %v3740_v10  ;;  %v506_v58 = vand.u32 4294901760, %v505_v49  ;;  %v511_v59 = vsub.f32 %v3815_v47, %v510_v52  ;;  %v3843_v61 = vsub.f32 %v381_v46, %v3823_v50  ;;  %v3848_v63 = vand.u32 4294901760, %v375_v57  ;;  %v302_v46 = vld [vmem:[%s3726_s18] sm:$0xff] }
  0x26   : > { %593 = vmatpush.xpose.msra.mxu2 %v3754_v16  ;;  %v516_v60 = vand.u32 4294901760, %v3829_v54  ;;  %v372_v0 = vsel %vm346_vm0, %v306_v62, 0  ;;  %v3857_v4 = vsub.f32 %v378_v53, %v3834_v56  ;;  %v369_v21 = vsel %vm346_vm0, %v305_v5, 0  ;;  %v3998_v16 = vld [vmem:[%s4958_s5] sm:$0xff] }
  0x27   : > { %v512_v1 = vand.u32 4294901760, %v511_v59  ;;  %v522_v3 = vand.u32 4294901760, %v3843_v61  ;;  %v3862_v6 = vand.u32 4294901760, %v372_v0  ;;  %v3865_v7 = vsub.f32 %v375_v57, %v3848_v63 }
  0x28   : > { %414 = vmatpush.xpose.msra.mxu0 %v3743_v12  ;;  %483 = vmatpush.xpose.msra.mxu1 %v482_v30  ;;  %v517_v2 = vsub.f32 %v3829_v54, %v516_v60  ;;  %v528_v17 = vand.u32 4294901760, %v3857_v4  ;;  %v3876_v23 = vand.u32 4294901760, %v369_v21  ;;  %v366_v31 = vsel %vm346_vm0, %v304_v22, 0 }
  0x29   : > { %661 = vmatpush.xpose.msra.mxu3 %v3743_v12  ;;  %v523_v15 = vsub.f32 %v3843_v61, %v522_v3  ;;  %v534_v29 = vand.u32 4294901760, %v3865_v7  ;;  %v3884_v30 = vsub.f32 %v372_v0, %v3862_v6  ;;  %v3897_v41 = vand.u32 4294901760, %v366_v31 }
  0x2a   : > { %596 = vmatpush.xpose.msra.mxu2 %v3773_v25  ;;  %v518_v11 = vand.u32 4294901760, %v517_v2  ;;  %v529_v27 = vsub.f32 %v3857_v4, %v528_v17  ;;  %v363_v45 = vsel %vm346_vm0, %v303_v34, 0  ;;  %v360_v57 = vsel %vm346_vm0, %v302_v46, 0  ;;  %v318_v2 = vld [vmem:[%s4954_s1] sm:$0xff]  ;;  %v319_v46 = vld [vmem:[%s4954_s1 + $0x8] sm:$0xff] }
  0x2b   : > { %v524_v26 = vand.u32 4294901760, %v523_v15  ;;  %v535_v40 = vsub.f32 %v3865_v7, %v534_v29  ;;  %v3909_v53 = vand.u32 4294901760, %v363_v45  ;;  %v3912_v55 = vsub.f32 %v366_v31, %v3897_v41 }
  0x2c   : > { %416 = vmatpush.xpose.msra.mxu0 %v3761_v20  ;;  %489 = vmatpush.xpose.msra.mxu1 %v488_v37  ;;  %v3891_v37 = vsub.f32 %v369_v21, %v3876_v23  ;;  %v530_v38 = vand.u32 4294901760, %v529_v27  ;;  %v3921_v62 = vand.u32 4294901760, %v360_v57  ;;  %v348_v5 = vsel %vm346_vm0, %v318_v2, 0 }
  0x2d   : > { %663 = vmatpush.xpose.msra.mxu3 %v3761_v20  ;;  %v536_v49 = vand.u32 4294901760, %v535_v40  ;;  %v552_v0 = vand.u32 4294901760, %v3912_v55 }
  0x2e   : > { %599 = vmatpush.xpose.msra.mxu2 %v3787_v33  ;;  %v546_v48 = vand.u32 4294901760, %v3891_v37 }
  0x2f   : > { %v553_v21 = vsub.f32 %v3912_v55, %v552_v0 }
  0x30   : > { %418 = vmatpush.xpose.msra.mxu0 %v3778_v28  ;;  %495 = vmatpush.xpose.msra.mxu1 %v494_v44  ;;  %v540_v44 = vand.u32 4294901760, %v3884_v30 }
  0x31   : > { %665 = vmatpush.xpose.msra.mxu3 %v3778_v28  ;;  %v554_v34 = vand.u32 4294901760, %v553_v21 }
  0x32   : > { %602 = vmatpush.xpose.msra.mxu2 %v3795_v36 }
  0x34   : > { %420 = vmatpush.xpose.msra.mxu0 %v3792_v35  ;;  %501 = vmatpush.xpose.msra.mxu1 %v500_v51  ;;  %v541_v51 = vsub.f32 %v3884_v30, %v540_v44 }
  0x35   : > { %667 = vmatpush.xpose.msra.mxu3 %v3792_v35 }
  0x36   : > { %605 = vmatpush.xpose.msra.mxu2 %v3815_v47  ;;  %v542_v59 = vand.u32 4294901760, %v541_v51 }
  0x38   : > { %422 = vmatpush.xpose.msra.mxu0 %v3806_v42  ;;  %507 = vmatpush.xpose.msra.mxu1 %v506_v58  ;;  %v547_v58 = vsub.f32 %v3891_v37, %v546_v48 }
  0x39   : > { %669 = vmatpush.xpose.msra.mxu3 %v3806_v42 }
  0x3a   : > { %608 = vmatpush.xpose.msra.mxu2 %v3829_v54  ;;  %v548_v15 = vand.u32 4294901760, %v547_v58 }
  0x3c   : > { %424 = vmatpush.xpose.msra.mxu0 %v3823_v50  ;;  %513 = vmatpush.xpose.msra.mxu1 %v512_v1  ;;  %v3925_v1 = vsub.f32 %v363_v45, %v3909_v53 }
  0x3d   : > { %671 = vmatpush.xpose.msra.mxu3 %v3823_v50 }
  0x3e   : > { %611 = vmatpush.xpose.msra.mxu2 %v3843_v61  ;;  %v558_v22 = vand.u32 4294901760, %v3925_v1 }
  0x40   : > { %426 = vmatpush.xpose.msra.mxu0 %v3834_v56  ;;  %519 = vmatpush.xpose.msra.mxu1 %v518_v11  ;;  %v3933_v11 = vand.u32 4294901760, %v348_v5 }
  0x41   : > { %673 = vmatpush.xpose.msra.mxu3 %v3834_v56 }
  0x42   : > { %614 = vmatpush.xpose.msra.mxu2 %v3857_v4  ;;  %v440_v27 = vsub.f32 %v348_v5, %v3933_v11 }
  0x44   : > { %428 = vmatpush.xpose.msra.mxu0 %v3848_v63  ;;  %525 = vmatpush.xpose.msra.mxu1 %v524_v26  ;;  %v3941_v26 = vsub.f32 %v360_v57, %v3921_v62  ;;  %v441_v31 = vand.u32 4294901760, %v440_v27 }
  0x45   : > { %675 = vmatpush.xpose.msra.mxu3 %v3848_v63 }
  0x46   : > { %617 = vmatpush.xpose.msra.mxu2 %v3865_v7  ;;  %v564_v40 = vand.u32 4294901760, %v3941_v26  ;;  %v442_v45 = vsub.f32 %v440_v27, %v441_v31 }
  0x48   : > { %430 = vmatpush.xpose.msra.mxu0 %v3862_v6  ;;  %531 = vmatpush.xpose.msra.mxu1 %v530_v38  ;;  %v559_v38 = vsub.f32 %v3925_v1, %v558_v22  ;;  %v443_v57 = vand.u32 4294901760, %v442_v45 }
  0x49   : > { %677 = vmatpush.xpose.msra.mxu3 %v3862_v6 }
  0x4a   : > { %620 = vmatpush.xpose.msra.mxu2 %v3884_v30  ;;  %v560_v58 = vand.u32 4294901760, %v559_v38  ;;  %v3626_v38 = vmov 0  }
  0x4b   : > { %3529 = vset.pattern.permute.xlu1 %v3626_v38  ;;  %3528 = vset.pattern.permute.xlu0 %v3626_v38 }
  0x4c   : > { %432 = vmatpush.xpose.msra.mxu0 %v3876_v23  ;;  %537 = vmatpush.xpose.msra.mxu1 %v536_v49  ;;  %v351_v49 = vsel %vm346_vm0, %v319_v46, 0  ;;  %v321_v46 = vld [vmem:[%s4954_s1 + $0x18] sm:$0xff] }
  0x4d   : > { %679 = vmatpush.xpose.msra.mxu3 %v3876_v23  ;;  %v3957_v51 = vand.u32 4294901760, %v351_v49  ;;  %333 = vperm.xlu1 %3529, %v3976_v13  }
  0x4e   : > { %623 = vmatpush.xpose.msra.mxu2 %v3891_v37 }
  0x4f   : > { %v448_v2 = vsub.f32 %v351_v49, %v3957_v51 }
  0x50   : > { %434 = vmatpush.xpose.msra.mxu0 %v3897_v41  ;;  %543 = vmatpush.xpose.msra.mxu1 %v542_v59  ;;  %v565_v59 = vsub.f32 %v3941_v26, %v564_v40 }
  0x51   : > { %681 = vmatpush.xpose.msra.mxu3 %v3897_v41  ;;  %v449_v5 = vand.u32 4294901760, %v448_v2 }
  0x52   : > { %626 = vmatpush.xpose.msra.mxu2 %v3912_v55 }
  0x53   : > { %v450_v21 = vsub.f32 %v448_v2, %v449_v5 }
  0x54   : > { %436 = vmatpush.xpose.msra.mxu0 %v3909_v53  ;;  %549 = vmatpush.xpose.msra.mxu1 %v548_v15  ;;  %v566_v15 = vand.u32 4294901760, %v565_v59 }
  0x55   : > { %683 = vmatpush.xpose.msra.mxu3 %v3909_v53  ;;  %v451_v45 = vand.u32 4294901760, %v450_v21  ;;  %328 = vperm.xlu1 %3529, %v3998_v16  }
  0x56   : > { %629 = vmatpush.xpose.msra.mxu2 %v3925_v1 }
  0x58   : > { %438 = vmatpush.xpose.msra.mxu0 %v3921_v62  ;;  %555 = vmatpush.xpose.msra.mxu1 %v554_v34  ;;  %v320_v34 = vld [vmem:[%s4954_s1 + $0x10] sm:$0xff] }
  0x59   : > { %685 = vmatpush.xpose.msra.mxu3 %v3921_v62 }
  0x5a   : > { %632 = vmatpush.xpose.msra.mxu2 %v3941_v26 }
  0x5b   : > { %444 = vmatmul.f32.vlgmr.msra.gmra.mxu0 %v443_v57 }
  0x5c   : > { %714 = vmatpush.xpose.msrb.mxu0 %v474_v18  ;;  %561 = vmatpush.xpose.msra.mxu1 %v560_v58  ;;  %v354_v18 = vsel %vm346_vm0, %v320_v34, 0 }
  0x5d   : > { %689 = vmatmul.f32.vlgmr.msra.gmra.mxu3 %v441_v31  ;;  %635 = vmatmul.f32.vlgmr.msra.gmra.mxu2 %v440_v27  ;;  %v3980_v31 = vand.u32 4294901760, %v354_v18 }
  0x5f   : > { %v456_v14 = vsub.f32 %v354_v18, %v3980_v31 }
  0x60   : > { %718 = vmatpush.xpose.msrb.mxu0 %v480_v19  ;;  %567 = vmatpush.xpose.msra.mxu1 %v566_v15 }
  0x61   : > { %v457_v19 = vand.u32 4294901760, %v456_v14 }
  0x63   : > { %452 = vmatmul.f32.gmra.mxu0 %v451_v45  ;;  %569 = vmatmul.f32.vlgmr.msra.gmra.mxu1 %v3933_v11  ;;  %v458_v27 = vsub.f32 %v456_v14, %v457_v19 }
  0x64   : > { %722 = vmatpush.xpose.msrb.mxu0 %v486_v24  ;;  %793 = vmatpush.xpose.msrb.mxu1 %v3736_v8  ;;  %v357_v8 = vsel %vm346_vm0, %v321_v46, 0 }
  0x65   : > { %695 = vmatmul.f32.gmra.mxu3 %v449_v5  ;;  %640 = vmatmul.f32.gmra.mxu2 %v448_v2  ;;  %v463_v24 = vand.u32 4294901760, %v357_v8  ;;  %v459_v49 = vand.u32 4294901760, %v458_v27 }
  0x67   : > { %v464_v57 = vsub.f32 %v357_v8, %v463_v24  ;;  %v846_v8 = vld [vmem:[%s4955_s2 + $0x8] sm:$0xff] }
  0x68   : > { %726 = vmatpush.xpose.msrb.mxu0 %v492_v32  ;;  %795 = vmatpush.xpose.msrb.mxu1 %v3738_v9  ;;  %v4012_v32 = vld [vmem:[%s4958_s5 + $0x18] sm:$0xff] }
  0x69   : > { %v465_v25 = vand.u32 4294901760, %v464_v57  ;;  %343 = vperm.xlu0 %3528, %v4012_v32  }
  0x6b   : > { %460 = vmatmul.f32.gmra.mxu0 %v459_v49  ;;  %573 = vmatmul.f32.gmra.mxu1 %v3957_v51  ;;  %v466_v9 = vsub.f32 %v464_v57, %v465_v25 }
  0x6c   : > { %730 = vmatpush.xpose.msrb.mxu0 %v498_v39  ;;  %797 = vmatpush.xpose.msrb.mxu1 %v3740_v10 }
  0x6d   : > { %701 = vmatmul.f32.gmra.mxu3 %v457_v19  ;;  %645 = vmatmul.f32.gmra.mxu2 %v456_v14  ;;  %v467_v10 = vand.u32 4294901760, %v466_v9 }
  0x70   : > { %734 = vmatpush.xpose.msrb.mxu0 %v504_v43  ;;  %799 = vmatpush.xpose.msrb.mxu1 %v3743_v12  ;;  %v4025_v12 = vld [vmem:[%s4958_s5 + $0x10] sm:$0xff] }
  0x71   : > { %338 = vperm.xlu0 %3528, %v4025_v12  }
  0x73   : > { %468 = vmatmul.f32.gmra.mxu0 %v467_v10  ;;  %577 = vmatmul.f32.gmra.mxu1 %v3980_v31 }
  0x74   : > { %738 = vmatpush.xpose.msrb.mxu0 %v510_v52  ;;  %801 = vmatpush.xpose.msrb.mxu1 %v3761_v20 }
  0x75   : > { %707 = vmatmul.f32.gmra.mxu3 %v465_v25  ;;  %650 = vmatmul.f32.gmra.mxu2 %v464_v57 }
  0x78   : > { %742 = vmatpush.xpose.msrb.mxu0 %v516_v60  ;;  %803 = vmatpush.xpose.msrb.mxu1 %v3778_v28 }
  0x7b   : > { %581 = vmatmul.f32.gmra.mxu1 %v463_v24 }
  0x7c   : > { %746 = vmatpush.xpose.msrb.mxu0 %v522_v3  ;;  %805 = vmatpush.xpose.msrb.mxu1 %v3792_v35 }
  0x80   : > { %750 = vmatpush.xpose.msrb.mxu0 %v528_v17  ;;  %807 = vmatpush.xpose.msrb.mxu1 %v3806_v42 }
  0x84   : > { %754 = vmatpush.xpose.msrb.mxu0 %v534_v29  ;;  %809 = vmatpush.xpose.msrb.mxu1 %v3823_v50 }
  0x88   : > { %758 = vmatpush.xpose.msrb.mxu0 %v540_v44  ;;  %811 = vmatpush.xpose.msrb.mxu1 %v3834_v56 }
  0x8c   : > { %762 = vmatpush.xpose.msrb.mxu0 %v546_v48  ;;  %813 = vmatpush.xpose.msrb.mxu1 %v3848_v63 }
  0x90   : > { %766 = vmatpush.xpose.msrb.mxu0 %v552_v0  ;;  %815 = vmatpush.xpose.msrb.mxu1 %v3862_v6 }
  0x94   : > { %770 = vmatpush.xpose.msrb.mxu0 %v558_v22  ;;  %817 = vmatpush.xpose.msrb.mxu1 %v3876_v23 }
  0x98   : > { %774 = vmatpush.xpose.msrb.mxu0 %v564_v40  ;;  %819 = vmatpush.xpose.msrb.mxu1 %v3897_v41 }
  0x9b   : > { %776 = vmatmul.f32.vlgmr.msrb.gmra.mxu0 %v3933_v11 }
  0x9c   : > { %821 = vmatpush.xpose.msrb.mxu1 %v3909_v53 }
  0xa0   : > { %823 = vmatpush.xpose.msrb.mxu1 %v3921_v62 }
  0xa3   : > { %780 = vmatmul.f32.gmra.mxu0 %v3957_v51  ;;  %825 = vmatmul.f32.vlgmr.msrb.gmra.mxu1 %v3933_v11  ;;  %v845_v11 = vld [vmem:[%s4955_s2] sm:$0xff] }
  0xa4   : > { %v867_v5 = vsel %vm865_vm1, %v845_v11, 0 }
  0xa5   : > { %v4064_v14 = vand.u32 4294901760, %v867_v5 }
  0xa7   : > { %v4070_v57 = vsub.f32 %v867_v5, %v4064_v14 }
  0xab   : > { %784 = vmatmul.f32.gmra.mxu0 %v3980_v31  ;;  %829 = vmatmul.f32.gmra.mxu1 %v3957_v51 }
  0xb3   : > { %788 = vmatmul.f32.gmra.mxu0 %v463_v24  ;;  %833 = vmatmul.f32.gmra.mxu1 %v3980_v31 }
  0xbb   : > { %837 = vmatmul.f32.gmra.mxu1 %v463_v24 }
  0xbf   : > { %v334_v52 = vpop.permute.xlu1 %333 }
  0xc7   : > { %v329_v3 = vpop.permute.xlu1 %328 }
  0xd8   : > { %v445_v20 = vpop.f32.mrf.mxu0 }
  0xd9   : > { %v446_v23 = vadd.f32 %v445_v20, %v329_v3  ;;  %v870_v20 = vsel %vm865_vm1, %v846_v8, 0 }
  0xdb   : > { %v344_v50 = vpop.permute.xlu0 %343 }
  0xe0   : > { %v570_v28 = vpop.f32.mrf.mxu1  ;;  %v453_v33 = vpop.f32.mrf.mxu0 }
  0xe1   : > { %v636_v43 = vpop.f32.mrf.mxu2  ;;  %v690_v47 = vpop.f32.mrf.mxu3  ;;  %v454_v7 = vadd.f32 %v453_v33, %v334_v52  ;;  %v571_v41 = vadd.f32 %v570_v28, %v446_v23  ;;  %v3627_v28 = vmov 1   ;;  %v847_v52 = vld [vmem:[%s4955_s2 + $0x10] sm:$0xff] }
  0xe2   : > { %3532 = vset.pattern.permute.xlu1 %v3627_v28  ;;  %3531 = vset.pattern.permute.xlu0 %v3627_v28 }
  0xe3   : > { %v339_v63 = vpop.permute.xlu0 %338  ;;  %v637_v1 = vadd.f32 %v636_v43, %v571_v41  ;;  %850 = vperm.xlu1 %3532, %v3998_v16   ;;  %854 = vperm.xlu0 %3531, %v3976_v13  }
  0xe4   : > { %3530 = vset.pattern.permute.xlu2 %v3627_v28 }
  0xe5   : > { %v691_v58 = vadd.f32 %v690_v47, %v637_v1  ;;  %862 = vperm.xlu2 %3530, %v4012_v32  }
  0xe8   : > { %v574_v35 = vpop.f32.mrf.mxu1  ;;  %v461_v36 = vpop.f32.mrf.mxu0 }
  0xe9   : > { %v641_v60 = vpop.f32.mrf.mxu2  ;;  %v696_v61 = vpop.f32.mrf.mxu3  ;;  %v462_v17 = vadd.f32 %v461_v36, %v339_v63  ;;  %v575_v30 = vadd.f32 %v574_v35, %v454_v7 }
  0xeb   : > { %v642_v53 = vadd.f32 %v641_v60, %v575_v30 }
  0xed   : > { %v697_v22 = vadd.f32 %v696_v61, %v642_v53  ;;  %858 = vperm.xlu2 %3530, %v4025_v12  }
  0xf0   : > { %v578_v39 = vpop.f32.mrf.mxu1  ;;  %v469_v42 = vpop.f32.mrf.mxu0 }
  0xf1   : > { %v646_v29 = vpop.f32.mrf.mxu2  ;;  %v579_v37 = vadd.f32 %v578_v39, %v462_v17  ;;  %v702_v44 = vpop.f32.mrf.mxu3  ;;  %v470_v55 = vadd.f32 %v469_v42, %v344_v50  ;;  %v900_v39 = vand.u32 4294901760, %v4070_v57  ;;  %v4083_v42 = vand.u32 4294901760, %v870_v20 }
  0xf3   : > { %v647_v62 = vadd.f32 %v646_v29, %v579_v37  ;;  %v901_v60 = vsub.f32 %v4070_v57, %v900_v39  ;;  %v4097_v61 = vsub.f32 %v870_v20, %v4083_v42 }
  0xf5   : > { %v703_v26 = vadd.f32 %v702_v44, %v647_v62  ;;  %v902_v23 = vand.u32 4294901760, %v901_v60  ;;  %v908_v29 = vand.u32 4294901760, %v4097_v61 }
  0xf7   : > { %v909_v62 = vsub.f32 %v4097_v61, %v908_v29 }
  0xf8   : > { %v582_v54 = vpop.f32.mrf.mxu1 }
  0xf9   : > { %v583_v40 = vadd.f32 %v582_v54, %v470_v55  ;;  %v651_v51 = vpop.f32.mrf.mxu2  ;;  %v708_v45 = vpop.f32.mrf.mxu3 }
  0xfb   : > { %v652_v34 = vadd.f32 %v651_v51, %v583_v40  ;;  %v910_v40 = vand.u32 4294901760, %v909_v62 }
  0xfd   : > { %v709_v24 = vadd.f32 %v708_v45, %v652_v34 }
 0x118   : > { %v777_v56 = vpop.f32.mrf.mxu0 }
 0x119   : > { %v778_v21 = vadd.f32 %v777_v56, %v691_v58 }
 0x120   : > { %v781_v4 = vpop.f32.mrf.mxu0  ;;  %v826_v6 = vpop.f32.mrf.mxu1 }
 0x121   : > { %v782_v59 = vadd.f32 %v781_v4, %v697_v22  ;;  %v827_v19 = vadd.f32 %v826_v6, %v778_v21  ;;  %v873_v6 = vsel %vm865_vm1, %v847_v52, 0 }
 0x122   : > { %v914_v30 = vand.u32 4294901760, %v873_v6 }
 0x123   : > { %v841_v25 = vmax.f32 %v827_v19, 0.0 }
 0x125   : > { %v4086_v43 = vand.u32 4294901760, %v841_v25 }
 0x127   : > { %v962_v63 = vsub.f32 %v841_v25, %v4086_v43 }
 0x128   : > { %v830_v48 = vpop.f32.mrf.mxu1  ;;  %v785_v0 = vpop.f32.mrf.mxu0 }
 0x129   : > { %v786_v2 = vadd.f32 %v785_v0, %v703_v26  ;;  %v831_v18 = vadd.f32 %v830_v48, %v782_v59  ;;  %v963_v44 = vand.u32 4294901760, %v962_v63  ;;  %v848_v48 = vld [vmem:[%s4955_s2 + $0x18] sm:$0xff]  ;;  %v915_v0 = vsub.f32 %v873_v6, %v914_v30 }
 0x12a   : > { %v876_v22 = vsel %vm865_vm1, %v848_v48, 0 }
 0x12b   : > { %v842_v49 = vmax.f32 %v831_v18, 0.0  ;;  %v964_v11 = vsub.f32 %v962_v63, %v963_v44  ;;  %v916_v51 = vand.u32 4294901760, %v915_v0  ;;  %v922_v58 = vand.u32 4294901760, %v876_v22 }
 0x12d   : > { %v4079_v35 = vand.u32 4294901760, %v842_v49  ;;  %v965_v59 = vand.u32 4294901760, %v964_v11  ;;  %v923_v5 = vsub.f32 %v876_v22, %v922_v58 }
 0x12f   : > { %v956_v54 = vsub.f32 %v842_v49, %v4079_v35  ;;  %v924_v21 = vand.u32 4294901760, %v923_v5 }
 0x130   : > { %v834_v15 = vpop.f32.mrf.mxu1  ;;  %v789_v46 = vpop.f32.mrf.mxu0 }
 0x131   : > { %v835_v31 = vadd.f32 %v834_v15, %v786_v2  ;;  %v790_v9 = vadd.f32 %v789_v46, %v709_v24  ;;  %v957_v17 = vand.u32 4294901760, %v956_v54  ;;  %v917_v2 = vsub.f32 %v915_v0, %v916_v51 }
 0x132   : > { %v925_v34 = vsub.f32 %v923_v5, %v924_v21 }
 0x133   : > { %v843_v27 = vmax.f32 %v835_v31, 0.0  ;;  %v958_v55 = vsub.f32 %v956_v54, %v957_v17  ;;  %v918_v15 = vand.u32 4294901760, %v917_v2  ;;  %v1161_v2 = vld [vmem:[%s4956_s3 + $0x8] sm:$0xff] }
 0x134   : > { %v926_v18 = vand.u32 4294901760, %v925_v34 }
 0x135   : > { %v4072_v10 = vand.u32 4294901760, %v843_v27  ;;  %v959_v26 = vand.u32 4294901760, %v958_v55 }
 0x137   : > { %v950_v47 = vsub.f32 %v843_v27, %v4072_v10 }
 0x138   : > { %v838_v33 = vpop.f32.mrf.mxu1 }
 0x139   : > { %v839_v36 = vadd.f32 %v838_v33, %v790_v9  ;;  %v951_v4 = vand.u32 4294901760, %v950_v47 }
 0x13b   : > { %v844_v50 = vmax.f32 %v839_v36, 0.0  ;;  %v952_v41 = vsub.f32 %v950_v47, %v951_v4 }
 0x13d   : > { %v890_v56 = vand.u32 4294901760, %v844_v50  ;;  %v953_v1 = vand.u32 4294901760, %v952_v41 }
 0x13f   : > { %v944_v3 = vsub.f32 %v844_v50, %v890_v56  ;;  %891 = vmatpush.msrb.mxu2 %v890_v56  ;;  %1132 = vmatpush.msra.mxu1 %v890_v56  ;;  %v863_v9 = vpop.permute.xlu2 %862 }
 0x141   : > { %893 = vmatpush.msrb.mxu2 %v4072_v10  ;;  %1134 = vmatpush.msra.mxu1 %v4072_v10  ;;  %v945_v7 = vand.u32 4294901760, %v944_v3 }
 0x143   : > { %895 = vmatpush.msrb.mxu2 %v4079_v35  ;;  %1089 = vmatpush.msra.mxu0 %v945_v7  ;;  %v946_v37 = vsub.f32 %v944_v3, %v945_v7 }
 0x144   : > { %1136 = vmatpush.msra.mxu1 %v4079_v35 }
 0x145   : > { %897 = vmatpush.msrb.mxu2 %v4086_v43  ;;  %1093 = vmatpush.msra.mxu0 %v951_v4  ;;  %v947_v53 = vand.u32 4294901760, %v946_v37 }
 0x146   : > { %1138 = vmatpush.msra.mxu1 %v4086_v43  ;;  %903 = vmatmul.f32.vlgmr.msrb.gmra.mxu2 %v902_v23 }
 0x147   : > { %998 = vmatpush.msra.mxu2 %v944_v3  ;;  %948 = vmatpush.msrb.mxu3 %v947_v53 }
 0x148   : > { %1097 = vmatpush.msra.mxu0 %v957_v17  ;;  %1140 = vmatmul.f32.vlgmr.msra.gmra.mxu1 %v4064_v14 }
 0x149   : > { %1001 = vmatpush.msra.mxu2 %v950_v47  ;;  %954 = vmatpush.msrb.mxu3 %v953_v1 }
 0x14a   : > { %1101 = vmatpush.msra.mxu0 %v963_v44 }
 0x14b   : > { %1004 = vmatpush.msra.mxu2 %v956_v54  ;;  %960 = vmatpush.msrb.mxu3 %v959_v26 }
 0x14c   : > { %1103 = vmatmul.f32.vlgmr.msra.gmra.mxu0 %v4064_v14 }
 0x14d   : > { %1007 = vmatpush.msra.mxu2 %v962_v63  ;;  %966 = vmatpush.msrb.mxu3 %v965_v59 }
 0x14e   : > { %911 = vmatmul.f32.gmra.mxu2 %v910_v40  ;;  %968 = vmatmul.f32.vlgmr.msrb.gmra.mxu3 %v4064_v14 }
 0x14f   : > { %1042 = vmatpush.msra.mxu3 %v890_v56 }
 0x150   : > { %1144 = vmatmul.f32.gmra.mxu1 %v4083_v42 }
 0x151   : > { %1044 = vmatpush.msra.mxu3 %v4072_v10 }
 0x153   : > { %1046 = vmatpush.msra.mxu3 %v4079_v35 }
 0x154   : > { %1107 = vmatmul.f32.gmra.mxu0 %v4083_v42 }
 0x155   : > { %1048 = vmatpush.msra.mxu3 %v4086_v43  ;;  %v855_v33 = vpop.permute.xlu0 %854  ;;  %v851_v35 = vpop.permute.xlu1 %850 }
 0x156   : > { %919 = vmatmul.f32.gmra.mxu2 %v918_v15  ;;  %972 = vmatmul.f32.gmra.mxu3 %v4083_v42  ;;  %v859_v42 = vpop.permute.xlu2 %858 }
 0x158   : > { %1148 = vmatmul.f32.gmra.mxu1 %v914_v30 }
 0x15c   : > { %1111 = vmatmul.f32.gmra.mxu0 %v914_v30 }
 0x15e   : > { %927 = vmatmul.f32.gmra.mxu2 %v926_v18  ;;  %976 = vmatmul.f32.gmra.mxu3 %v914_v30  ;;  %v1160_v30 = vld [vmem:[%s4956_s3] sm:$0xff] }
 0x15f   : > { %v1181_v55 = vsel %vm865_vm1, %v1160_v30, 0 }
 0x160   : > { %1152 = vmatmul.f32.gmra.mxu1 %v922_v58  ;;  %v4135_v22 = vand.u32 4294901760, %v1181_v55 }
 0x162   : > { %v4141_v34 = vsub.f32 %v1181_v55, %v4135_v22 }
 0x164   : > { %1115 = vmatmul.f32.gmra.mxu0 %v922_v58 }
 0x166   : > { %980 = vmatmul.f32.gmra.mxu3 %v922_v58  ;;  %1010 = vmatmul.f32.vlgmr.msra.gmra.mxu2 %v4070_v57 }
 0x16e   : > { %1015 = vmatmul.f32.gmra.mxu2 %v4097_v61  ;;  %1052 = vmatmul.f32.vlgmr.msra.gmra.mxu3 %v900_v39 }
 0x176   : > { %1020 = vmatmul.f32.gmra.mxu2 %v915_v0  ;;  %1058 = vmatmul.f32.gmra.mxu3 %v908_v29 }
 0x17e   : > { %1025 = vmatmul.f32.gmra.mxu2 %v923_v5  ;;  %1064 = vmatmul.f32.gmra.mxu3 %v916_v51 }
 0x186   : > { %1070 = vmatmul.f32.gmra.mxu3 %v924_v21 }
 0x1c5   : > { %v1141_v57 = vpop.f32.mrf.mxu1 }
 0x1c9   : > { %v904_v31 = vpop.f32.mrf.mxu2  ;;  %v1104_v25 = vpop.f32.mrf.mxu0 }
 0x1ca   : > { %v905_v47 = vadd.f32 %v904_v31, %v851_v35 }
 0x1cd   : > { %v1145_v43 = vpop.f32.mrf.mxu1 }
 0x1d1   : > { %v912_v45 = vpop.f32.mrf.mxu2  ;;  %v969_v14 = vpop.f32.mrf.mxu3 }
 0x1d2   : > { %v1108_v36 = vpop.f32.mrf.mxu0  ;;  %v913_v39 = vadd.f32 %v912_v45, %v855_v33  ;;  %v970_v60 = vadd.f32 %v969_v14, %v905_v47  ;;  %v1184_v14 = vsel %vm865_vm1, %v1161_v2, 0 }
 0x1d5   : > { %v1149_v29 = vpop.f32.mrf.mxu1 }
 0x1d9   : > { %v920_v19 = vpop.f32.mrf.mxu2  ;;  %v973_v27 = vpop.f32.mrf.mxu3 }
 0x1da   : > { %v974_v52 = vadd.f32 %v973_v27, %v913_v39  ;;  %v921_v54 = vadd.f32 %v920_v19, %v859_v42  ;;  %v1112_v6 = vpop.f32.mrf.mxu0  ;;  %v3628_v19 = vmov 2  }
 0x1db   : > { %3535 = vset.pattern.permute.xlu0 %v3628_v19  ;;  %3534 = vset.pattern.permute.xlu1 %v3628_v19 }
 0x1dc   : > { %1165 = vperm.xlu0 %3535, %v3998_v16   ;;  %1173 = vperm.xlu1 %3534, %v4025_v12   ;;  %v1162_v16 = vld [vmem:[%s4956_s3 + $0x10] sm:$0xff] }
 0x1dd   : > { %v1153_v21 = vpop.f32.mrf.mxu1  ;;  %3533 = vset.pattern.permute.xlu2 %v3628_v19  ;;  %v1187_v42 = vsel %vm865_vm1, %v1162_v16, 0 }
 0x1de   : > { %1177 = vperm.xlu2 %3533, %v4012_v32  }
 0x1e1   : > { %v928_v46 = vpop.f32.mrf.mxu2  ;;  %v977_v8 = vpop.f32.mrf.mxu3 }
 0x1e2   : > { %v978_v63 = vadd.f32 %v977_v8, %v921_v54  ;;  %v929_v37 = vadd.f32 %v928_v46, %v863_v9  ;;  %v1116_v59 = vpop.f32.mrf.mxu0  ;;  %v1214_v8 = vand.u32 4294901760, %v4141_v34  ;;  %v4180_v54 = vand.u32 4294901760, %v1187_v42 }
 0x1e4   : > { %3536 = vset.pattern.permute.xlu1 %v3626_v38  ;;  %3538 = vset.pattern.permute.xlu0 %v3627_v28 }
 0x1e5   : > { %1885 = vperm.xlu1 %3536, %v4012_v32   ;;  %2403 = vperm.xlu0 %3538, %v4012_v32  }
 0x1e6   : > { %1169 = vperm.xlu2 %3533, %v3976_v13  }
 0x1e9   : > { %v981_v24 = vpop.f32.mrf.mxu3  ;;  %v1011_v49 = vpop.f32.mrf.mxu2 }
 0x1ea   : > { %v1012_v3 = vadd.f32 %v1011_v49, %v970_v60  ;;  %v982_v0 = vadd.f32 %v981_v24, %v929_v37  ;;  %v4154_v24 = vand.u32 4294901760, %v1184_v14 }
 0x1ec   : > { %v4168_v33 = vsub.f32 %v1184_v14, %v4154_v24 }
 0x1ed   : > { %3542 = vset.pattern.permute.xlu0 %v3628_v19 }
 0x1ee   : > { %3537 = vset.pattern.permute.xlu2 %v3626_v38  ;;  %2713 = vperm.xlu0 %3542, %v4025_v12  }
 0x1ef   : > { %1880 = vperm.xlu2 %3537, %v4025_v12  }
 0x1f1   : > { %v1016_v10 = vpop.f32.mrf.mxu2  ;;  %v1053_v20 = vpop.f32.mrf.mxu3 }
 0x1f2   : > { %v1017_v61 = vadd.f32 %v1016_v10, %v974_v52  ;;  %v1054_v7 = vadd.f32 %v1053_v20, %v1012_v3  ;;  %v1215_v20 = vsub.f32 %v4141_v34, %v1214_v8  ;;  %v1222_v52 = vand.u32 4294901760, %v4168_v33 }
 0x1f4   : > { %v1105_v48 = vadd.f32 %v1104_v25, %v1054_v7  ;;  %v1223_v13 = vsub.f32 %v4168_v33, %v1222_v52 }
 0x1f6   : > { %v1142_v26 = vadd.f32 %v1141_v57, %v1105_v48  ;;  %v1224_v30 = vand.u32 4294901760, %v1223_v13 }
 0x1f8   : > { %v1156_v18 = vmax.f32 %v1142_v26, 0.0 }
 0x1f9   : > { %v1059_v50 = vpop.f32.mrf.mxu3  ;;  %v1021_v56 = vpop.f32.mrf.mxu2 }
 0x1fa   : > { %v1060_v4 = vadd.f32 %v1059_v50, %v1017_v61  ;;  %v1022_v17 = vadd.f32 %v1021_v56, %v978_v63  ;;  %v4157_v49 = vand.u32 4294901760, %v1156_v18  ;;  %v1216_v50 = vand.u32 4294901760, %v1215_v20  ;;  %v1163_v63 = vld [vmem:[%s4956_s3 + $0x18] sm:$0xff] }
 0x1fc   : > { %v1109_v41 = vadd.f32 %v1108_v36, %v1060_v4  ;;  %v1276_v36 = vsub.f32 %v1156_v18, %v4157_v49 }
 0x1fe   : > { %v1146_v1 = vadd.f32 %v1145_v43, %v1109_v41  ;;  %v1277_v61 = vand.u32 4294901760, %v1276_v36 }
 0x200   : > { %v1157_v5 = vmax.f32 %v1146_v1, 0.0 }
 0x201   : > { %v1065_v23 = vpop.f32.mrf.mxu3  ;;  %v1026_v62 = vpop.f32.mrf.mxu2 }
 0x202   : > { %v1066_v44 = vadd.f32 %v1065_v23, %v1022_v17  ;;  %v1027_v40 = vadd.f32 %v1026_v62, %v982_v0  ;;  %v4150_v27 = vand.u32 4294901760, %v1157_v5  ;;  %v1278_v17 = vsub.f32 %v1276_v36, %v1277_v61 }
 0x203   : > { %v1190_v23 = vsel %vm865_vm1, %v1163_v63, 0  ;;  %v1474_v63 = vld [vmem:[%s4957_s4] sm:$0xff] }
 0x204   : > { %v1113_v53 = vadd.f32 %v1112_v6, %v1066_v44  ;;  %v1270_v10 = vsub.f32 %v1157_v5, %v4150_v27  ;;  %v1229_v6 = vsub.f32 %v1187_v42, %v4180_v54  ;;  %v1236_v41 = vand.u32 4294901760, %v1190_v23 }
 0x205   : > { %v1279_v44 = vand.u32 4294901760, %v1278_v17 }
 0x206   : > { %v1150_v11 = vadd.f32 %v1149_v29, %v1113_v53  ;;  %v1271_v47 = vand.u32 4294901760, %v1270_v10  ;;  %v1230_v37 = vand.u32 4294901760, %v1229_v6  ;;  %v1237_v53 = vsub.f32 %v1190_v23, %v1236_v41  ;;  %v3476_v23 = vld [vmem:[%s3726_s18 + $0xf0] sm:$0xff] }
 0x208   : > { %v1158_v51 = vmax.f32 %v1150_v11, 0.0  ;;  %v1272_v4 = vsub.f32 %v1270_v10, %v1271_v47  ;;  %v1231_v48 = vsub.f32 %v1229_v6, %v1230_v37  ;;  %v1238_v55 = vand.u32 4294901760, %v1237_v53 }
 0x209   : > { %v1071_v58 = vpop.f32.mrf.mxu3 }
 0x20a   : > { %v1072_v15 = vadd.f32 %v1071_v58, %v1027_v40  ;;  %v4143_v31 = vand.u32 4294901760, %v1158_v51  ;;  %v1273_v29 = vand.u32 4294901760, %v1272_v4  ;;  %v1232_v38 = vand.u32 4294901760, %v1231_v48 }
 0x20b   : > { %v1239_v32 = vsub.f32 %v1237_v53, %v1238_v55 }
 0x20c   : > { %v1117_v45 = vadd.f32 %v1116_v59, %v1072_v15  ;;  %v1264_v9 = vsub.f32 %v1158_v51, %v4143_v31 }
 0x20d   : > { %v1240_v62 = vand.u32 4294901760, %v1239_v32 }
 0x20e   : > { %v1154_v46 = vadd.f32 %v1153_v21, %v1117_v45  ;;  %v1265_v39 = vand.u32 4294901760, %v1264_v9 }
 0x210   : > { %v1159_v25 = vmax.f32 %v1154_v46, 0.0  ;;  %v1266_v60 = vsub.f32 %v1264_v9, %v1265_v39 }
 0x212   : > { %v4163_v57 = vand.u32 4294901760, %v1159_v25  ;;  %v1267_v7 = vand.u32 4294901760, %v1266_v60  ;;  %v3477_v60 = vld [vmem:[%s3726_s18 + $0xf8] sm:$0xff] }
 0x213   : > { %v1946_v17 = vsel %vm346_vm0, %v3477_v60, 0 }
 0x214   : > { %v1258_v35 = vsub.f32 %v1159_v25, %v4163_v57  ;;  %1205 = vmatpush.msrb.mxu2 %v4163_v57  ;;  %1356 = vmatpush.msrb.mxu1 %v4163_v57 }
 0x216   : > { %1207 = vmatpush.msrb.mxu2 %v4143_v31  ;;  %1312 = vmatpush.msrb.mxu0 %v1258_v35  ;;  %v1259_v43 = vand.u32 4294901760, %v1258_v35 }
 0x217   : > { %1358 = vmatpush.msrb.mxu1 %v4143_v31 }
 0x218   : > { %1209 = vmatpush.msrb.mxu2 %v4150_v27  ;;  %1315 = vmatpush.msrb.mxu0 %v1264_v9  ;;  %v1260_v56 = vsub.f32 %v1258_v35, %v1259_v43 }
 0x219   : > { %1360 = vmatpush.msrb.mxu1 %v4150_v27 }
 0x21a   : > { %1211 = vmatpush.msrb.mxu2 %v4157_v49  ;;  %1318 = vmatpush.msrb.mxu0 %v1270_v10  ;;  %v1261_v3 = vand.u32 4294901760, %v1260_v56 }
 0x21b   : > { %1362 = vmatpush.msrb.mxu1 %v4157_v49  ;;  %1217 = vmatmul.f32.vlgmr.msrb.gmra.mxu2 %v1216_v50 }
 0x21c   : > { %1403 = vmatpush.msra.mxu2 %v1259_v43  ;;  %1262 = vmatpush.msrb.mxu3 %v1261_v3 }
 0x21d   : > { %1321 = vmatpush.msrb.mxu0 %v1276_v36  ;;  %1366 = vmatmul.f32.vlgmr.msrb.gmra.mxu1 %v1214_v8 }
 0x21e   : > { %1407 = vmatpush.msra.mxu2 %v1265_v39  ;;  %1268 = vmatpush.msrb.mxu3 %v1267_v7 }
 0x21f   : > { %1324 = vmatmul.f32.vlgmr.msrb.gmra.mxu0 %v4141_v34 }
 0x220   : > { %1411 = vmatpush.msra.mxu2 %v1271_v47  ;;  %1274 = vmatpush.msrb.mxu3 %v1273_v29 }
 0x222   : > { %1415 = vmatpush.msra.mxu2 %v1277_v61  ;;  %1280 = vmatpush.msrb.mxu3 %v1279_v44 }
 0x223   : > { %1225 = vmatmul.f32.gmra.mxu2 %v1224_v30  ;;  %1282 = vmatmul.f32.vlgmr.msrb.gmra.mxu3 %v4135_v22 }
 0x224   : > { %1446 = vmatpush.msra.mxu3 %v4163_v57 }
 0x225   : > { %1372 = vmatmul.f32.gmra.mxu1 %v1222_v52 }
 0x226   : > { %1448 = vmatpush.msra.mxu3 %v4143_v31 }
 0x227   : > { %1329 = vmatmul.f32.gmra.mxu0 %v4168_v33 }
 0x228   : > { %1450 = vmatpush.msra.mxu3 %v4150_v27 }
 0x22a   : > { %1452 = vmatpush.msra.mxu3 %v4157_v49 }
 0x22b   : > { %1233 = vmatmul.f32.gmra.mxu2 %v1232_v38  ;;  %1286 = vmatmul.f32.gmra.mxu3 %v4154_v24  ;;  %v1943_v38 = vsel %vm346_vm0, %v3476_v23, 0 }
 0x22d   : > { %1378 = vmatmul.f32.gmra.mxu1 %v1230_v37  ;;  %v1495_v37 = vsel %vm865_vm1, %v1474_v63, 0 }
 0x22e   : > { %v4229_v32 = vand.u32 4294901760, %v1495_v37 }
 0x22f   : > { %1334 = vmatmul.f32.gmra.mxu0 %v1229_v6 }
 0x233   : > { %1241 = vmatmul.f32.gmra.mxu2 %v1240_v62  ;;  %1290 = vmatmul.f32.gmra.mxu3 %v4180_v54  ;;  %v3475_v62 = vld [vmem:[%s3726_s18 + $0xe8] sm:$0xff] }
 0x235   : > { %1384 = vmatmul.f32.gmra.mxu1 %v1238_v55  ;;  %v4227_v55 = vld [vmem:[%s4958_s5 + $0x8] sm:$0xff] }
 0x236   : > { %1875 = vperm.xlu1 %3536, %v4227_v55  }
 0x237   : > { %1339 = vmatmul.f32.gmra.mxu0 %v1237_v53  ;;  %v4221_v53 = vand.u32 4294901760, %v1946_v17 }
 0x238   : > { %v1178_v2 = vpop.permute.xlu2 %1177 }
 0x23b   : > { %1294 = vmatmul.f32.gmra.mxu3 %v1236_v41  ;;  %1417 = vmatmul.f32.vlgmr.msra.gmra.mxu2 %v4135_v22 }
 0x23e   : > { %3539 = vset.pattern.permute.xlu1 %v3627_v28 }
 0x23f   : > { %2399 = vperm.xlu1 %3539, %v4025_v12   ;;  %v1476_v12 = vld [vmem:[%s4957_s4 + $0x10] sm:$0xff] }
 0x240   : > { %v1170_v34 = vpop.permute.xlu2 %1169 }
 0x243   : > { %1421 = vmatmul.f32.gmra.mxu2 %v4154_v24  ;;  %1454 = vmatmul.f32.vlgmr.msra.gmra.mxu3 %v4135_v22 }
 0x24b   : > { %1425 = vmatmul.f32.gmra.mxu2 %v4180_v54  ;;  %1458 = vmatmul.f32.gmra.mxu3 %v4154_v24 }
 0x24e   : > { %v1174_v31 = vpop.permute.xlu1 %1173  ;;  %v1166_v45 = vpop.permute.xlu0 %1165 }
 0x253   : > { %1429 = vmatmul.f32.gmra.mxu2 %v1236_v41  ;;  %1462 = vmatmul.f32.gmra.mxu3 %v4180_v54 }
 0x25b   : > { %1466 = vmatmul.f32.gmra.mxu3 %v1236_v41 }
 0x29a   : > { %v1367_v5 = vpop.f32.mrf.mxu1 }
 0x29c   : > { %v1325_v51 = vpop.f32.mrf.mxu0 }
 0x29e   : > { %v1218_v0 = vpop.f32.mrf.mxu2 }
 0x29f   : > { %v1219_v24 = vadd.f32 %v1218_v0, %v1166_v45 }
 0x2a2   : > { %v1373_v18 = vpop.f32.mrf.mxu1 }
 0x2a4   : > { %v1330_v21 = vpop.f32.mrf.mxu0 }
 0x2a6   : > { %v1226_v1 = vpop.f32.mrf.mxu2  ;;  %v1283_v11 = vpop.f32.mrf.mxu3 }
 0x2a7   : > { %v1227_v46 = vadd.f32 %v1226_v1, %v1170_v34  ;;  %v1284_v16 = vadd.f32 %v1283_v11, %v1219_v24 }
 0x2a9   : > { %v1326_v39 = vadd.f32 %v1325_v51, %v1284_v16 }
 0x2aa   : > { %v1379_v57 = vpop.f32.mrf.mxu1 }
 0x2ab   : > { %v1368_v52 = vadd.f32 %v1367_v5, %v1326_v39  ;;  %v1475_v5 = vld [vmem:[%s4957_s4 + $0x8] sm:$0xff] }
 0x2ac   : > { %v1335_v49 = vpop.f32.mrf.mxu0 }
 0x2ae   : > { %v1234_v26 = vpop.f32.mrf.mxu2  ;;  %v1287_v40 = vpop.f32.mrf.mxu3 }
 0x2af   : > { %v1235_v8 = vadd.f32 %v1234_v26, %v1174_v31  ;;  %v1288_v25 = vadd.f32 %v1287_v40, %v1227_v46  ;;  %v4235_v40 = vand.u32 4294901760, %v1943_v38 }
 0x2b1   : > { %v1331_v20 = vadd.f32 %v1330_v21, %v1288_v25  ;;  %v4254_v31 = vsub.f32 %v1943_v38, %v4235_v40 }
 0x2b2   : > { %v1385_v7 = vpop.f32.mrf.mxu1 }
 0x2b3   : > { %v1374_v42 = vadd.f32 %v1373_v18, %v1331_v20  ;;  %v2021_v20 = vand.u32 4294901760, %v4254_v31 }
 0x2b4   : > { %v1340_v50 = vpop.f32.mrf.mxu0 }
 0x2b5   : > { %v2022_v63 = vsub.f32 %v4254_v31, %v2021_v20 }
 0x2b6   : > { %v1242_v58 = vpop.f32.mrf.mxu2  ;;  %v1291_v59 = vpop.f32.mrf.mxu3 }
 0x2b7   : > { %v1292_v9 = vadd.f32 %v1291_v59, %v1235_v8  ;;  %v1243_v33 = vadd.f32 %v1242_v58, %v1178_v2  ;;  %v4240_v59 = vsub.f32 %v1946_v17, %v4221_v53  ;;  %v1940_v2 = vsel %vm346_vm0, %v3475_v62, 0 }
 0x2b8   : > { %v4256_v45 = vand.u32 4294901760, %v1940_v2  ;;  %v2023_v62 = vand.u32 4294901760, %v2022_v63 }
 0x2b9   : > { %v1336_v35 = vadd.f32 %v1335_v49, %v1292_v9  ;;  %v2015_v8 = vand.u32 4294901760, %v4240_v59 }
 0x2bb   : > { %v1380_v43 = vadd.f32 %v1379_v57, %v1336_v35 }
 0x2be   : > { %v1295_v15 = vpop.f32.mrf.mxu3  ;;  %v1418_v22 = vpop.f32.mrf.mxu2 }
 0x2bf   : > { %v1296_v47 = vadd.f32 %v1295_v15, %v1243_v33  ;;  %v1419_v3 = vadd.f32 %v1418_v22, %v1368_v52  ;;  %v4247_v15 = vsub.f32 %v1495_v37, %v4229_v32  ;;  %v3474_v22 = vld [vmem:[%s3726_s18 + $0xe0] sm:$0xff]  ;;  %v4279_v33 = vsub.f32 %v1940_v2, %v4256_v45  ;;  %v3471_v37 = vld [vmem:[%s3726_s18 + $0xc8] sm:$0xff] }
 0x2c0   : > { %v1937_v24 = vsel %vm346_vm0, %v3474_v22, 0  ;;  %v1477_v22 = vld [vmem:[%s4957_s4 + $0x18] sm:$0xff] }
 0x2c1   : > { %v1341_v4 = vadd.f32 %v1340_v50, %v1296_v47  ;;  %v1528_v49 = vand.u32 4294901760, %v4247_v15  ;;  %v4281_v35 = vand.u32 4294901760, %v1937_v24 }
 0x2c3   : > { %v1386_v44 = vadd.f32 %v1385_v7, %v1341_v4  ;;  %v1529_v47 = vsub.f32 %v4247_v15, %v1528_v49  ;;  %v4315_v4 = vsub.f32 %v1937_v24, %v4281_v35 }
 0x2c6   : > { %v1422_v14 = vpop.f32.mrf.mxu2  ;;  %v1455_v27 = vpop.f32.mrf.mxu3 }
 0x2c7   : > { %v1423_v54 = vadd.f32 %v1422_v14, %v1374_v42  ;;  %v1456_v29 = vadd.f32 %v1455_v27, %v1419_v3  ;;  %v1498_v14 = vsel %vm865_vm1, %v1475_v5, 0  ;;  %v2027_v3 = vand.u32 4294901760, %v4279_v33 }
 0x2c8   : > { %v4274_v57 = vand.u32 4294901760, %v1498_v14  ;;  %v1928_v5 = vsel %vm346_vm0, %v3471_v37, 0 }
 0x2c9   : > { %v1470_v0 = vmax.f32 %v1456_v29, 0.0  ;;  %v1530_v29 = vand.u32 4294901760, %v1529_v47 }
 0x2ca   : > { %v4306_v60 = vsub.f32 %v1498_v14, %v4274_v57 }
 0x2cb   : > { %v4250_v21 = vand.u32 4294901760, %v1470_v0 }
 0x2cd   : > { %v4272_v9 = vsub.f32 %v1470_v0, %v4250_v21  ;;  %v2028_v0 = vsub.f32 %v4279_v33, %v2027_v3 }
 0x2ce   : > { %v1459_v10 = vpop.f32.mrf.mxu3  ;;  %v1426_v36 = vpop.f32.mrf.mxu2 }
 0x2cf   : > { %v1427_v56 = vadd.f32 %v1426_v36, %v1380_v43  ;;  %v1460_v13 = vadd.f32 %v1459_v10, %v1423_v54  ;;  %v3473_v10 = vld [vmem:[%s3726_s18 + $0xd8] sm:$0xff]  ;;  %v4287_v36 = vld [vmem:[%s4958_s5] sm:$0xff]  ;;  %v2016_v43 = vsub.f32 %v4240_v59, %v2015_v8  ;;  %v2029_v24 = vand.u32 4294901760, %v2028_v0 }
 0x2d0   : > { %v1934_v50 = vsel %vm346_vm0, %v3473_v10, 0  ;;  %1870 = vperm.xlu2 %3537, %v4287_v36   ;;  %2391 = vperm.xlu1 %3539, %v4287_v36   ;;  %v3466_v0 = vld [vmem:[%s3726_s18 + $0xa0] sm:$0xff] }
 0x2d1   : > { %v1471_v48 = vmax.f32 %v1460_v13, 0.0  ;;  %v1501_v13 = vsel %vm865_vm1, %v1476_v12, 0  ;;  %v2017_v7 = vand.u32 4294901760, %v2016_v43  ;;  %v4321_v23 = vand.u32 4294901760, %v1934_v50  ;;  %v3469_v43 = vld [vmem:[%s3726_s18 + $0xb8] sm:$0xff] }
 0x2d2   : > { %v4329_v38 = vand.u32 4294901760, %v1501_v13 }
 0x2d3   : > { %v4237_v51 = vand.u32 4294901760, %v1471_v48 }
 0x2d5   : > { %v4262_v46 = vsub.f32 %v1471_v48, %v4237_v51  ;;  %v1536_v48 = vand.u32 4294901760, %v4306_v60 }
 0x2d6   : > { %v1463_v61 = vpop.f32.mrf.mxu3  ;;  %v1430_v41 = vpop.f32.mrf.mxu2 }
 0x2d7   : > { %v1464_v6 = vadd.f32 %v1463_v61, %v1427_v56  ;;  %v1431_v1 = vadd.f32 %v1430_v41, %v1386_v44  ;;  %v1585_v42 = vand.u32 4294901760, %v4262_v46  ;;  %v1591_v56 = vand.u32 4294901760, %v4272_v9  ;;  %v3472_v61 = vld [vmem:[%s3726_s18 + $0xd0] sm:$0xff] }
 0x2d8   : > { %v1537_v14 = vsub.f32 %v4306_v60, %v1536_v48  ;;  %3540 = vset.pattern.permute.xlu2 %v3627_v28  ;;  %3543 = vset.pattern.permute.xlu1 %v3628_v19 }
 0x2d9   : > { %v1472_v30 = vmax.f32 %v1464_v6, 0.0  ;;  %v1586_v17 = vsub.f32 %v4262_v46, %v1585_v42  ;;  %v1592_v44 = vsub.f32 %v4272_v9, %v1591_v56  ;;  %2395 = vperm.xlu2 %3540, %v4227_v55   ;;  %2709 = vperm.xlu1 %3543, %v4227_v55  }
 0x2da   : > { %v1538_v12 = vand.u32 4294901760, %v1537_v14 }
 0x2db   : > { %v4233_v11 = vand.u32 4294901760, %v1472_v30 }
 0x2dd   : > { %v1578_v18 = vsub.f32 %v1472_v30, %v4233_v11  ;;  %v1931_v30 = vsel %vm346_vm0, %v3472_v61, 0  ;;  %v3468_v61 = vld [vmem:[%s3726_s18 + $0xb0] sm:$0xff] }
 0x2de   : > { %v1467_v26 = vpop.f32.mrf.mxu3  ;;  %v4339_v2 = vand.u32 4294901760, %v1931_v30 }
 0x2df   : > { %v1468_v58 = vadd.f32 %v1467_v26, %v1431_v1  ;;  %v1579_v16 = vand.u32 4294901760, %v1578_v18  ;;  %v2033_v1 = vand.u32 4294901760, %v4315_v4  ;;  %v1587_v26 = vand.u32 4294901760, %v1586_v17 }
 0x2e0   : > { %v1919_v17 = vsel %vm346_vm0, %v3468_v61, 0 }
 0x2e1   : > { %v1473_v34 = vmax.f32 %v1468_v58, 0.0  ;;  %v1580_v54 = vsub.f32 %v1578_v18, %v1579_v16  ;;  %v4337_v58 = vsub.f32 %v1934_v50, %v4321_v23  ;;  %3541 = vset.pattern.permute.xlu2 %v3628_v19 }
 0x2e3   : > { %v4259_v27 = vand.u32 4294901760, %v1473_v34  ;;  %v1581_v41 = vand.u32 4294901760, %v1580_v54  ;;  %v2039_v10 = vand.u32 4294901760, %v4337_v58 }
 0x2e5   : > { %v1572_v25 = vsub.f32 %v1473_v34, %v4259_v27  ;;  %1519 = vmatpush.msra.mxu0 %v4259_v27  ;;  %1670 = vmatpush.msrb.mxu3 %v4259_v27  ;;  %v3470_v34 = vld [vmem:[%s3726_s18 + $0xc0] sm:$0xff] }
 0x2e7   : > { %1521 = vmatpush.msra.mxu0 %v4233_v11  ;;  %1626 = vmatpush.msrb.mxu2 %v1572_v25  ;;  %v1573_v39 = vand.u32 4294901760, %v1572_v25 }
 0x2e8   : > { %1672 = vmatpush.msrb.mxu3 %v4233_v11 }
 0x2e9   : > { %1523 = vmatpush.msra.mxu0 %v4237_v51  ;;  %1629 = vmatpush.msrb.mxu2 %v1578_v18  ;;  %v1574_v52 = vsub.f32 %v1572_v25, %v1573_v39  ;;  %v1593_v18 = vand.u32 4294901760, %v1592_v44  ;;  %v4354_v25 = vand.u32 4294901760, %v1928_v5 }
 0x2ea   : > { %1674 = vmatpush.msrb.mxu3 %v4237_v51 }
 0x2eb   : > { %1525 = vmatpush.msra.mxu0 %v4250_v21  ;;  %1632 = vmatpush.msrb.mxu2 %v4262_v46  ;;  %v1575_v6 = vand.u32 4294901760, %v1574_v52  ;;  %v4351_v46 = vsub.f32 %v1501_v13, %v4329_v38  ;;  %v4376_v52 = vsub.f32 %v1928_v5, %v4354_v25  ;;  %v4437_v5 = vld [vmem:[%s4958_s5 + $0x18] sm:$0xff] }
 0x2ec   : > { %1676 = vmatpush.msrb.mxu3 %v4250_v21  ;;  %1531 = vmatmul.f32.vlgmr.msra.gmra.mxu0 %v1530_v29 }
 0x2ed   : > { %1717 = vmatpush.msrb.mxu0 %v1573_v39  ;;  %1576 = vmatpush.msra.mxu1 %v1575_v6  ;;  %v4362_v39 = vsub.f32 %v1931_v30, %v4339_v2  ;;  %v1544_v47 = vand.u32 4294901760, %v4351_v46  ;;  %v2051_v63 = vand.u32 4294901760, %v4376_v52 }
 0x2ee   : > { %1635 = vmatpush.msrb.mxu2 %v4272_v9  ;;  %2018 = vmatpush.xpose.msra.mxu3 %v2017_v7  ;;  %v1504_v9 = vsel %vm865_vm1, %v1477_v22, 0 }
 0x2ef   : > { %1721 = vmatpush.msrb.mxu0 %v1579_v16  ;;  %1582 = vmatpush.msra.mxu1 %v1581_v41  ;;  %v2034_v16 = vsub.f32 %v4315_v4, %v2033_v1  ;;  %v4371_v50 = vand.u32 4294901760, %v1504_v9  ;;  %v1545_v28 = vsub.f32 %v4351_v46, %v1544_v47  ;;  %v2052_v37 = vsub.f32 %v4376_v52, %v2051_v63 }
 0x2f0   : > { %1949 = vmatpush.xpose.msra.mxu2 %v4221_v53  ;;  %1680 = vmatmul.f32.vlgmr.msrb.gmra.mxu3 %v1528_v49  ;;  %v2045_v49 = vand.u32 4294901760, %v4362_v39 }
 0x2f1   : > { %1725 = vmatpush.msrb.mxu0 %v1585_v42  ;;  %1638 = vmatmul.f32.vlgmr.msrb.gmra.mxu2 %v4247_v15  ;;  %v1925_v42 = vsel %vm346_vm0, %v3470_v34, 0  ;;  %v2035_v15 = vand.u32 4294901760, %v2034_v16  ;;  %v1546_v29 = vand.u32 4294901760, %v1545_v28  ;;  %v2053_v22 = vand.u32 4294901760, %v2052_v37  ;;  %v3465_v16 = vld [vmem:[%s3726_s18 + $0x98] sm:$0xff]  ;;  %v3464_v28 = vld [vmem:[%s3726_s18 + $0x90] sm:$0xff] }
 0x2f2   : > { %1588 = vmatpush.msra.mxu1 %v1587_v26  ;;  %2024 = vmatpush.xpose.msra.mxu3 %v2023_v62  ;;  %v4378_v54 = vand.u32 4294901760, %v1925_v42  ;;  %v2046_v7 = vsub.f32 %v4362_v39, %v2045_v49 }
 0x2f3   : > { %1729 = vmatpush.msrb.mxu0 %v1591_v56  ;;  %v1922_v56 = vsel %vm346_vm0, %v3469_v43, 0  ;;  %2717 = vperm.xlu2 %3541, %v4437_v5  }
 0x2f4   : > { %1951 = vmatpush.xpose.msra.mxu2 %v4235_v40  ;;  %1594 = vmatpush.msra.mxu1 %v1593_v18  ;;  %v4400_v13 = vsub.f32 %v1925_v42, %v4378_v54  ;;  %v4402_v6 = vand.u32 4294901760, %v1922_v56  ;;  %v2047_v44 = vand.u32 4294901760, %v2046_v7  ;;  %v3629_v42 = vmov 3  }
 0x2f5   : > { %1596 = vmatmul.f32.vlgmr.msra.gmra.mxu1 %v4229_v32  ;;  %1539 = vmatmul.f32.gmra.mxu0 %v1538_v12 }
 0x2f6   : > { %1760 = vmatpush.msrb.mxu1 %v4259_v27  ;;  %2030 = vmatpush.xpose.msra.mxu3 %v2029_v24  ;;  %v2040_v27 = vsub.f32 %v4337_v58, %v2039_v10  ;;  %v4423_v41 = vsub.f32 %v1922_v56, %v4402_v6  ;;  %v1913_v24 = vsel %vm346_vm0, %v3466_v0, 0  ;;  %v1910_v56 = vsel %vm346_vm0, %v3465_v16, 0 }
 0x2f7   : > { %2128 = vmatpush.xpose.msra.mxu0 %v4240_v59  ;;  %3546 = vset.pattern.permute.xlu0 %v3629_v42  ;;  %v4458_v43 = vand.u32 4294901760, %v1913_v24 }
 0x2f8   : > { %1953 = vmatpush.xpose.msra.mxu2 %v4256_v45  ;;  %1762 = vmatpush.msrb.mxu1 %v4233_v11  ;;  %v4394_v11 = vsub.f32 %v1504_v9, %v4371_v50  ;;  %v2063_v34 = vand.u32 4294901760, %v4423_v41 }
 0x2f9   : > { %1643 = vmatmul.f32.gmra.mxu2 %v4306_v60  ;;  %1686 = vmatmul.f32.gmra.mxu3 %v1536_v48  ;;  %v2057_v60 = vand.u32 4294901760, %v4400_v13  ;;  %v4426_v48 = vand.u32 4294901760, %v1919_v17  ;;  %v4480_v61 = vsub.f32 %v1913_v24, %v4458_v43 }
 0x2fa   : > { %1764 = vmatpush.msrb.mxu1 %v4237_v51  ;;  %2036 = vmatpush.xpose.msra.mxu3 %v2035_v15  ;;  %v2041_v51 = vand.u32 4294901760, %v2040_v27  ;;  %v1552_v30 = vand.u32 4294901760, %v4394_v11  ;;  %v2064_v15 = vsub.f32 %v4423_v41, %v2063_v34 }
 0x2fb   : > { %2131 = vmatpush.xpose.msra.mxu0 %v4254_v31  ;;  %v2058_v19 = vsub.f32 %v4400_v13, %v2057_v60  ;;  %v4447_v18 = vsub.f32 %v1919_v17, %v4426_v48  ;;  %3544 = vset.pattern.permute.xlu1 %v3629_v42  ;;  %v4487_v17 = vand.u32 4294901760, %v1910_v56  ;;  %v2081_v37 = vand.u32 4294901760, %v4480_v61 }
 0x2fc   : > { %1955 = vmatpush.xpose.msra.mxu2 %v4281_v35  ;;  %1766 = vmatpush.msrb.mxu1 %v4250_v21  ;;  %v3467_v21 = vld [vmem:[%s3726_s18 + $0xa8] sm:$0xff]  ;;  %v1553_v26 = vsub.f32 %v4394_v11, %v1552_v30 }
 0x2fd   : > { %1600 = vmatmul.f32.gmra.mxu1 %v4274_v57  ;;  %v1916_v62 = vsel %vm346_vm0, %v3467_v21, 0  ;;  %1547 = vmatmul.f32.gmra.mxu0 %v1546_v29  ;;  %v2059_v12 = vand.u32 4294901760, %v2058_v19  ;;  %v2069_v27 = vand.u32 4294901760, %v4447_v18  ;;  %v1907_v29 = vsel %vm346_vm0, %v3464_v28, 0  ;;  %v3463_v21 = vld [vmem:[%s3726_s18 + $0x88] sm:$0xff] }
 0x2fe   : > { %2196 = vmatpush.xpose.msra.mxu1 %v4221_v53  ;;  %2042 = vmatpush.xpose.msra.mxu3 %v2041_v51  ;;  %v4449_v14 = vand.u32 4294901760, %v1916_v62  ;;  %v1554_v9 = vand.u32 4294901760, %v1553_v26  ;;  %v2065_v51 = vand.u32 4294901760, %v2064_v15  ;;  %v4503_v0 = vand.u32 4294901760, %v1907_v29  ;;  %v4525_v15 = vld [vmem:[%s4958_s5 + $0x8] sm:$0xff] }
 0x2ff   : > { %2134 = vmatpush.xpose.msra.mxu0 %v4279_v33  ;;  %2705 = vperm.xlu2 %3541, %v4287_v36   ;;  %v2070_v7 = vsub.f32 %v4447_v18, %v2069_v27  ;;  %v1904_v26 = vsel %vm346_vm0, %v3463_v21, 0  ;;  %v2082_v19 = vsub.f32 %v4480_v61, %v2081_v37  ;;  %v1863_v33 = vld [vmem:[%s4954_s1 + $0x18] sm:$0xff] }
 0x300   : > { %1957 = vmatpush.xpose.msra.mxu2 %v4321_v23  ;;  %3019 = vperm.xlu0 %3546, %v4287_v36   ;;  %v4516_v16 = vsub.f32 %v1907_v29, %v4503_v0  ;;  %v4545_v29 = vld [vmem:[%s4958_s5 + $0x10] sm:$0xff] }
 0x301   : > { %1648 = vmatmul.f32.gmra.mxu2 %v4351_v46  ;;  %1692 = vmatmul.f32.gmra.mxu3 %v1544_v47  ;;  %v4465_v46 = vsub.f32 %v1916_v62, %v4449_v14  ;;  %v4470_v47 = vld [vmem:[%s4958_s5] sm:$0xff] }
 0x302   : > { %2198 = vmatpush.xpose.msra.mxu1 %v4235_v40  ;;  %2048 = vmatpush.xpose.msra.mxu3 %v2047_v44  ;;  %v2071_v44 = vand.u32 4294901760, %v2070_v7  ;;  %v2093_v28 = vand.u32 4294901760, %v4516_v16 }
 0x303   : > { %1479 = vperm.xlu1 %3544, %v4470_v47   ;;  %2137 = vmatpush.xpose.msra.mxu0 %v4315_v4 }
 0x304   : > { %1959 = vmatpush.xpose.msra.mxu2 %v4339_v2 }
 0x305   : > { %1604 = vmatmul.f32.gmra.mxu1 %v4329_v38  ;;  %1555 = vmatmul.f32.gmra.mxu0 %v1554_v9 }
 0x306   : > { %2054 = vmatpush.xpose.msra.mxu3 %v2053_v22  ;;  %2200 = vmatpush.xpose.msra.mxu1 %v4256_v45  ;;  %v3462_v22 = vld [vmem:[%s3726_s18 + $0x80] sm:$0xff]  ;;  %s4735_s18 = scalar_lea.vmem [#allocation3], %s3458_s24 }
 0x307   : > { %2140 = vmatpush.xpose.msra.mxu0 %v4337_v58  ;;  %3545 = vset.pattern.permute.xlu2 %v3629_v42  ;;  %v1901_v42 = vsel %vm346_vm0, %v3462_v22, 0  ;;  %v3630_v22 = vmov 4  }
 0x308   : > { %1961 = vmatpush.xpose.msra.mxu2 %v4354_v25  ;;  %1483 = vperm.xlu2 %3545, %v4525_v15   ;;  %v4539_v7 = vand.u32 4294901760, %v1901_v42 }
 0x309   : > { %1653 = vmatmul.f32.gmra.mxu2 %v4394_v11  ;;  %v2075_v11 = vand.u32 4294901760, %v4465_v46  ;;  %1698 = vmatmul.f32.gmra.mxu3 %v1552_v30  ;;  %v4501_v30 = vsub.f32 %v1910_v56, %v4487_v17  ;;  %v2083_v56 = vand.u32 4294901760, %v2082_v19 }
 0x30a   : > { %2060 = vmatpush.xpose.msra.mxu3 %v2059_v12  ;;  %2202 = vmatpush.xpose.msra.mxu1 %v4281_v35  ;;  %v4518_v12 = vand.u32 4294901760, %v1904_v26 }
 0x30b   : > { %v2076_v62 = vsub.f32 %v4465_v46, %v2075_v11  ;;  %3023 = vperm.xlu1 %3544, %v4227_v55   ;;  %v2087_v9 = vand.u32 4294901760, %v4501_v30  ;;  %2143 = vmatpush.xpose.msra.mxu0 %v4362_v39 }
 0x30c   : > { %1963 = vmatpush.xpose.msra.mxu2 %v4378_v54  ;;  %3031 = vperm.xlu0 %3546, %v4437_v5  }
 0x30d   : > { %1608 = vmatmul.f32.gmra.mxu1 %v4371_v50  ;;  %1731 = vmatmul.f32.vlgmr.msrb.gmra.mxu0 %v4229_v32  ;;  %v2077_v24 = vand.u32 4294901760, %v2076_v62 }
 0x30e   : > { %2066 = vmatpush.xpose.msra.mxu3 %v2065_v51  ;;  %2204 = vmatpush.xpose.msra.mxu1 %v4321_v23  ;;  %v4537_v51 = vsub.f32 %v1904_v26, %v4518_v12  ;;  %v4556_v26 = vsub.f32 %v1901_v42, %v4539_v7 }
 0x30f   : > { %2146 = vmatpush.xpose.msra.mxu0 %v4376_v52 }
 0x310   : > { %1965 = vmatpush.xpose.msra.mxu2 %v4402_v6  ;;  %v2099_v62 = vand.u32 4294901760, %v4537_v51  ;;  %1487 = vperm.xlu2 %3545, %v4545_v29   ;;  %v2105_v42 = vand.u32 4294901760, %v4556_v26 }
 0x312   : > { %2072 = vmatpush.xpose.msra.mxu3 %v2071_v44  ;;  %2206 = vmatpush.xpose.msra.mxu1 %v4339_v2  ;;  %v2094_v44 = vsub.f32 %v4516_v16, %v2093_v28 }
 0x313   : > { %3027 = vperm.xlu1 %3544, %v4545_v29   ;;  %2149 = vmatpush.xpose.msra.mxu0 %v4400_v13 }
 0x314   : > { %1967 = vmatpush.xpose.msra.mxu2 %v4426_v48  ;;  %3549 = vset.pattern.permute.xlu0 %v3630_v22  ;;  %v2095_v19 = vand.u32 4294901760, %v2094_v44 }
 0x315   : > { %1768 = vmatmul.f32.vlgmr.msrb.gmra.mxu1 %v4229_v32  ;;  %v2088_v32 = vsub.f32 %v4501_v30, %v2087_v9  ;;  %1735 = vmatmul.f32.gmra.mxu0 %v4274_v57 }
 0x316   : > { %2078 = vmatpush.xpose.msra.mxu3 %v2077_v24  ;;  %2208 = vmatpush.xpose.msra.mxu1 %v4354_v25  ;;  %v2100_v24 = vsub.f32 %v4537_v51, %v2099_v62 }
 0x317   : > { %v2089_v21 = vand.u32 4294901760, %v2088_v32  ;;  %3329 = vperm.xlu0 %3549, %v4287_v36   ;;  %2152 = vmatpush.xpose.msra.mxu0 %v4423_v41 }
 0x318   : > { %1969 = vmatpush.xpose.msra.mxu2 %v4449_v14  ;;  %v2101_v32 = vand.u32 4294901760, %v2100_v24  ;;  %1491 = vperm.xlu2 %3545, %v4437_v5   ;;  %v1861_v24 = vld [vmem:[%s4954_s1 + $0x8] sm:$0xff] }
 0x31a   : > { %2084 = vmatpush.xpose.msra.mxu3 %v2083_v56  ;;  %2210 = vmatpush.xpose.msra.mxu1 %v4378_v54 }
 0x31b   : > { %3547 = vset.pattern.permute.xlu1 %v3630_v22  ;;  %2155 = vmatpush.xpose.msra.mxu0 %v4447_v18 }
 0x31c   : > { %1971 = vmatpush.xpose.msra.mxu2 %v4458_v43  ;;  %1789 = vperm.xlu1 %3547, %v4470_v47  }
 0x31d   : > { %1772 = vmatmul.f32.gmra.mxu1 %v4274_v57  ;;  %v1860_v57 = vld [vmem:[%s4954_s1] sm:$0xff]  ;;  %1739 = vmatmul.f32.gmra.mxu0 %v4329_v38 }
 0x31e   : > { %2090 = vmatpush.xpose.msra.mxu3 %v2089_v21  ;;  %v1889_v56 = vsel %vm346_vm0, %v1860_v57, 0  ;;  %2212 = vmatpush.xpose.msra.mxu1 %v4402_v6  ;;  %v2106_v21 = vsub.f32 %v4556_v26, %v2105_v42  ;;  %v1892_v57 = vsel %vm346_vm0, %v1861_v24, 0 }
 0x31f   : > { %v4575_v36 = vand.u32 4294901760, %v1889_v56  ;;  %2158 = vmatpush.xpose.msra.mxu0 %v4465_v46  ;;  %3341 = vperm.xlu0 %3549, %v4437_v5  }
 0x320   : > { %1973 = vmatpush.xpose.msra.mxu2 %v4487_v17  ;;  %3548 = vset.pattern.permute.xlu2 %v3630_v22 }
 0x321   : > { %v4584_v44 = vsub.f32 %v1889_v56, %v4575_v36  ;;  %v4601_v56 = vand.u32 4294901760, %v1892_v57  ;;  %1793 = vperm.xlu2 %3548, %v4525_v15  }
 0x322   : > { %2096 = vmatpush.xpose.msra.mxu3 %v2095_v19  ;;  %2214 = vmatpush.xpose.msra.mxu1 %v4426_v48  ;;  %v2107_v19 = vand.u32 4294901760, %v2106_v21 }
 0x323   : > { %v1982_v47 = vand.u32 4294901760, %v4584_v44  ;;  %2161 = vmatpush.xpose.msra.mxu0 %v4480_v61 }
 0x324   : > { %1975 = vmatpush.xpose.msra.mxu2 %v4503_v0  ;;  %3333 = vperm.xlu1 %3547, %v4227_v55   ;;  %v1862_v55 = vld [vmem:[%s4954_s1 + $0x10] sm:$0xff] }
 0x325   : > { %1776 = vmatmul.f32.gmra.mxu1 %v4329_v38  ;;  %v1983_v38 = vsub.f32 %v4584_v44, %v1982_v47  ;;  %1743 = vmatmul.f32.gmra.mxu0 %v4371_v50  ;;  %v1895_v59 = vsel %vm346_vm0, %v1862_v55, 0 }
 0x326   : > { %2102 = vmatpush.xpose.msra.mxu3 %v2101_v32  ;;  %2216 = vmatpush.xpose.msra.mxu1 %v4449_v14  ;;  %v1989_v32 = vsub.f32 %v1892_v57, %v4601_v56 }
 0x327   : > { %v1984_v21 = vand.u32 4294901760, %v1983_v38  ;;  %2164 = vmatpush.xpose.msra.mxu0 %v4501_v30 }
 0x328   : > { %1977 = vmatpush.xpose.msra.mxu2 %v4518_v12  ;;  %v1990_v24 = vand.u32 4294901760, %v1989_v32 }
 0x329   : > { %1797 = vperm.xlu2 %3548, %v4545_v29  }
 0x32a   : > { %2108 = vmatpush.xpose.msra.mxu3 %v2107_v19  ;;  %2218 = vmatpush.xpose.msra.mxu1 %v4458_v43 }
 0x32b   : > { %2167 = vmatpush.xpose.msra.mxu0 %v4516_v16 }
 0x32c   : > { %1979 = vmatpush.xpose.msra.mxu2 %v4539_v7  ;;  %3337 = vperm.xlu1 %3547, %v4545_v29  }
 0x32d   : > { %1780 = vmatmul.f32.gmra.mxu1 %v4371_v50  ;;  %2110 = vmatmul.f32.vlgmr.msra.gmra.mxu3 %v4575_v36 }
 0x32e   : > { %2334 = vmatpush.xpose.msrb.mxu3 %v4221_v53  ;;  %v1991_v53 = vsub.f32 %v1989_v32, %v1990_v24  ;;  %2220 = vmatpush.xpose.msra.mxu1 %v4487_v17 }
 0x32f   : > { %1985 = vmatmul.f32.vlgmr.msra.gmra.mxu2 %v1984_v21  ;;  %2170 = vmatpush.xpose.msra.mxu0 %v4537_v51 }
 0x330   : > { %2255 = vmatpush.xpose.msrb.mxu2 %v2015_v8  ;;  %v4623_v8 = vand.u32 4294901760, %v1895_v59 }
 0x331   : > { %1801 = vperm.xlu2 %3548, %v4437_v5  }
 0x332   : > { %2336 = vmatpush.xpose.msrb.mxu3 %v4235_v40  ;;  %v1997_v31 = vsub.f32 %v1895_v59, %v4623_v8  ;;  %v1992_v40 = vand.u32 4294901760, %v1991_v53  ;;  %2222 = vmatpush.xpose.msra.mxu1 %v4503_v0 }
 0x333   : > { %2173 = vmatpush.xpose.msra.mxu0 %v4556_v26 }
 0x334   : > { %2259 = vmatpush.xpose.msrb.mxu2 %v2021_v20  ;;  %v1998_v20 = vand.u32 4294901760, %v1997_v31 }
 0x335   : > { %2114 = vmatmul.f32.gmra.mxu3 %v4601_v56 }
 0x336   : > { %2338 = vmatpush.xpose.msrb.mxu3 %v4256_v45  ;;  %v1898_v45 = vsel %vm346_vm0, %v1863_v33, 0  ;;  %2224 = vmatpush.xpose.msra.mxu1 %v4518_v12 }
 0x337   : > { %1993 = vmatmul.f32.gmra.mxu2 %v1992_v40  ;;  %v4643_v50 = vand.u32 4294901760, %v1898_v45  ;;  %2176 = vmatmul.f32.vlgmr.msra.gmra.mxu0 %v4584_v44 }
 0x338   : > { %2263 = vmatpush.xpose.msrb.mxu2 %v2027_v3  ;;  %v1999_v3 = vsub.f32 %v1997_v31, %v1998_v20 }
 0x339   : > { %v2005_v4 = vsub.f32 %v1898_v45, %v4643_v50 }
 0x33a   : > { %2340 = vmatpush.xpose.msrb.mxu3 %v4281_v35  ;;  %v2000_v35 = vand.u32 4294901760, %v1999_v3  ;;  %2226 = vmatpush.xpose.msra.mxu1 %v4539_v7 }
 0x33c   : > { %2267 = vmatpush.xpose.msrb.mxu2 %v2033_v1  ;;  %v2006_v1 = vand.u32 4294901760, %v2005_v4 }
 0x33d   : > { %2118 = vmatmul.f32.gmra.mxu3 %v4623_v8  ;;  %2230 = vmatmul.f32.vlgmr.msra.gmra.mxu1 %v1982_v47 }
 0x33e   : > { %2342 = vmatpush.xpose.msrb.mxu3 %v4321_v23  ;;  %v2007_v23 = vsub.f32 %v2005_v4, %v2006_v1 }
 0x33f   : > { %2001 = vmatmul.f32.gmra.mxu2 %v2000_v35  ;;  %2181 = vmatmul.f32.gmra.mxu0 %v1989_v32 }
 0x340   : > { %2271 = vmatpush.xpose.msrb.mxu2 %v2039_v10  ;;  %v2008_v58 = vand.u32 4294901760, %v2007_v23  ;;  %v4663_v10 = vpop.permute.xlu2 %1880 }
 0x342   : > { %2344 = vmatpush.xpose.msrb.mxu3 %v4339_v2 }
 0x344   : > { %2275 = vmatpush.xpose.msrb.mxu2 %v2045_v49 }
 0x345   : > { %2122 = vmatmul.f32.gmra.mxu3 %v4643_v50  ;;  %2236 = vmatmul.f32.gmra.mxu1 %v1990_v24 }
 0x346   : > { %2346 = vmatpush.xpose.msrb.mxu3 %v4354_v25  ;;  %v4677_v25 = vpop.permute.xlu1 %1885 }
 0x347   : > { %2009 = vmatmul.f32.gmra.mxu2 %v2008_v58  ;;  %2186 = vmatmul.f32.gmra.mxu0 %v1997_v31 }
 0x348   : > { %2279 = vmatpush.xpose.msrb.mxu2 %v2051_v63  ;;  %v4675_v2 = vpop.permute.xlu2 %1870 }
 0x34a   : > { %2348 = vmatpush.xpose.msrb.mxu3 %v4378_v54 }
 0x34c   : > { %2283 = vmatpush.xpose.msrb.mxu2 %v2057_v60 }
 0x34d   : > { %2242 = vmatmul.f32.gmra.mxu1 %v1998_v20 }
 0x34e   : > { %2350 = vmatpush.xpose.msrb.mxu3 %v4402_v6  ;;  %v4689_v52 = vpop.permute.xlu1 %1875 }
 0x34f   : > { %2191 = vmatmul.f32.gmra.mxu0 %v2005_v4 }
 0x350   : > { %2287 = vmatpush.xpose.msrb.mxu2 %v2063_v34  ;;  %v4685_v39 = vpop.permute.xlu2 %2395 }
 0x352   : > { %2352 = vmatpush.xpose.msrb.mxu3 %v4426_v48 }
 0x354   : > { %2291 = vmatpush.xpose.msrb.mxu2 %v2069_v27 }
 0x355   : > { %2248 = vmatmul.f32.gmra.mxu1 %v2006_v1 }
 0x356   : > { %2354 = vmatpush.xpose.msrb.mxu3 %v4449_v14  ;;  %v4700_v49 = vpop.permute.xlu1 %2399 }
 0x358   : > { %2295 = vmatpush.xpose.msrb.mxu2 %v2075_v11  ;;  %v4698_v54 = vpop.permute.xlu2 %2717 }
 0x35a   : > { %2356 = vmatpush.xpose.msrb.mxu3 %v4458_v43 }
 0x35c   : > { %2299 = vmatpush.xpose.msrb.mxu2 %v2081_v37 }
 0x35e   : > { %2358 = vmatpush.xpose.msrb.mxu3 %v4487_v17  ;;  %v4709_v6 = vpop.permute.xlu1 %2391 }
 0x360   : > { %2303 = vmatpush.xpose.msrb.mxu2 %v2087_v9  ;;  %v4707_v13 = vpop.permute.xlu2 %2705 }
 0x362   : > { %2360 = vmatpush.xpose.msrb.mxu3 %v4503_v0 }
 0x364   : > { %2307 = vmatpush.xpose.msrb.mxu2 %v2093_v28 }
 0x366   : > { %2362 = vmatpush.xpose.msrb.mxu3 %v4518_v12  ;;  %v4713_v34 = vpop.permute.xlu1 %2709 }
 0x368   : > { %2311 = vmatpush.xpose.msrb.mxu2 %v2099_v62  ;;  %v1484_v48 = vpop.permute.xlu2 %1483 }
 0x369   : > { %v1532_v63 = vpop.f32.mrf.mxu0 }
 0x36a   : > { %2364 = vmatpush.xpose.msrb.mxu3 %v4539_v7 }
 0x36c   : > { %2315 = vmatpush.xpose.msrb.mxu2 %v2105_v42 }
 0x36d   : > { %2366 = vmatmul.f32.vlgmr.msrb.gmra.mxu3 %v4575_v36 }
 0x36f   : > { %2317 = vmatmul.f32.vlgmr.msrb.gmra.mxu2 %v4575_v36 }
 0x370   : > { %v1488_v46 = vpop.permute.xlu2 %1487 }
 0x372   : > { %v1597_v60 = vpop.f32.mrf.mxu1  ;;  %v1540_v41 = vpop.f32.mrf.mxu0 }
 0x373   : > { %v1681_v27 = vpop.f32.mrf.mxu3  ;;  %v1541_v17 = vadd.f32 %v1540_v41, %v1484_v48 }
 0x374   : > { %v1639_v14 = vpop.f32.mrf.mxu2 }
 0x375   : > { %2370 = vmatmul.f32.gmra.mxu3 %v4601_v56  ;;  %v1480_v61 = vpop.permute.xlu1 %1479 }
 0x376   : > { %v1533_v37 = vadd.f32 %v1532_v63, %v1480_v61 }
 0x377   : > { %2321 = vmatmul.f32.gmra.mxu2 %v4601_v56 }
 0x378   : > { %v1598_v12 = vadd.f32 %v1597_v60, %v1533_v37  ;;  %v1492_v15 = vpop.permute.xlu2 %1491 }
 0x37a   : > { %v1601_v5 = vpop.f32.mrf.mxu1  ;;  %v1548_v18 = vpop.f32.mrf.mxu0  ;;  %v1640_v29 = vadd.f32 %v1639_v14, %v1598_v12 }
 0x37b   : > { %v1602_v16 = vadd.f32 %v1601_v5, %v1541_v17  ;;  %v1549_v7 = vadd.f32 %v1548_v18, %v1488_v46 }
 0x37c   : > { %v1644_v30 = vpop.f32.mrf.mxu2  ;;  %v1687_v9 = vpop.f32.mrf.mxu3  ;;  %v1682_v36 = vadd.f32 %v1681_v27, %v1640_v29 }
 0x37d   : > { %2374 = vmatmul.f32.gmra.mxu3 %v4623_v8  ;;  %v4719_v28 = vpop.permute.xlu1 %3023  ;;  %v1645_v62 = vadd.f32 %v1644_v30, %v1602_v16 }
 0x37f   : > { %2325 = vmatmul.f32.gmra.mxu2 %v4623_v8  ;;  %v1688_v44 = vadd.f32 %v1687_v9, %v1645_v62 }
 0x380   : > { %v1794_v38 = vpop.permute.xlu2 %1793 }
 0x382   : > { %v1605_v43 = vpop.f32.mrf.mxu1  ;;  %v1556_v11 = vpop.f32.mrf.mxu0 }
 0x383   : > { %v1606_v42 = vadd.f32 %v1605_v43, %v1549_v7  ;;  %v1557_v57 = vadd.f32 %v1556_v11, %v1492_v15 }
 0x384   : > { %v1649_v22 = vpop.f32.mrf.mxu2  ;;  %v1693_v47 = vpop.f32.mrf.mxu3 }
 0x385   : > { %2378 = vmatmul.f32.gmra.mxu3 %v4643_v50  ;;  %v1650_v56 = vadd.f32 %v1649_v22, %v1606_v42  ;;  %v4721_v32 = vpop.permute.xlu1 %3027 }
 0x387   : > { %2329 = vmatmul.f32.gmra.mxu2 %v4643_v50  ;;  %v1694_v59 = vadd.f32 %v1693_v47, %v1650_v56 }
 0x388   : > { %v1798_v4 = vpop.permute.xlu2 %1797 }
 0x38a   : > { %v1609_v0 = vpop.f32.mrf.mxu1  ;;  %v1732_v51 = vpop.f32.mrf.mxu0 }
 0x38b   : > { %v1733_v21 = vadd.f32 %v1732_v51, %v1682_v36  ;;  %v1610_v53 = vadd.f32 %v1609_v0, %v1557_v57  ;;  %v1817_v51 = vstv %s4723_s22  ;;  %s3392_s22 = sshll.u32 %s4735_s18, 4  ;;  %s3393_s22 = int_to_ptr.vmem [resolvable:$true] %s3392_s22 }
 0x38c   : > { %v1654_v40 = vpop.f32.mrf.mxu2  ;;  %v1699_v35 = vpop.f32.mrf.mxu3 }
 0x38d   : > { %v1655_v45 = vadd.f32 %v1654_v40, %v1610_v53 }
 0x38e   : > { %v1790_v23 = vpop.permute.xlu1 %1789 }
 0x38f   : > { %v1700_v63 = vadd.f32 %v1699_v35, %v1655_v45 }
 0x390   : > { %v1802_v61 = vpop.permute.xlu2 %1801 }
 0x392   : > { %v1769_v26 = vpop.f32.mrf.mxu1  ;;  %v1736_v19 = vpop.f32.mrf.mxu0 }
 0x393   : > { %v1737_v24 = vadd.f32 %v1736_v19, %v1688_v44  ;;  %v1770_v8 = vadd.f32 %v1769_v26, %v1733_v21  ;;  %v1838_v21 = vlaneseq }
 0x395   : > { %v1784_v3 = vmax.f32 %v1770_v8, 0.0  ;;  %vm4731_vm5 = vcmp.lt.s32.totalorder %v1838_v21, 128 }
 0x397   : > { %v1804_v48 = vmul.f32 %v1790_v23, %v1784_v3 }
 0x39a   : > { %v1773_v55 = vpop.f32.mrf.mxu1  ;;  %v1740_v20 = vpop.f32.mrf.mxu0 }
 0x39b   : > { %v1774_v31 = vadd.f32 %v1773_v55, %v1737_v24  ;;  %v1741_v33 = vadd.f32 %v1740_v20, %v1694_v59 }
 0x39d   : > { %v1785_v50 = vmax.f32 %v1774_v31, 0.0 }
 0x39f   : > { %v1805_v60 = vmul.f32 %v1794_v38, %v1785_v50 }
 0x3a1   : > { %v1808_v43 = vadd.f32 %v1805_v60, %v1804_v48 }
 0x3a2   : > { %v1777_v1 = vpop.f32.mrf.mxu1  ;;  %v1744_v5 = vpop.f32.mrf.mxu0 }
 0x3a3   : > { %v1778_v58 = vadd.f32 %v1777_v1, %v1741_v33  ;;  %v1745_v18 = vadd.f32 %v1744_v5, %v1700_v63 }
 0x3a5   : > { %v1786_v41 = vmax.f32 %v1778_v58, 0.0 }
 0x3a7   : > { %v1806_v14 = vmul.f32 %v1798_v4, %v1786_v41 }
 0x3a9   : > { %v1809_v17 = vadd.f32 %v1808_v43, %v1806_v14 }
 0x3aa   : > { %v1781_v27 = vpop.f32.mrf.mxu1 }
 0x3ab   : > { %v1782_v46 = vadd.f32 %v1781_v27, %v1745_v18 }
 0x3ad   : > { %v1787_v11 = vmax.f32 %v1782_v46, 0.0 }
 0x3af   : > { %v1807_v37 = vmul.f32 %v1802_v61, %v1787_v11 }
 0x3b0   : > { %v2111_v22 = vpop.f32.mrf.mxu3 }
 0x3b1   : > { %v1810_v30 = vadd.f32 %v1809_v17, %v1807_v37 }
 0x3b2   : > { %v1986_v26 = vpop.f32.mrf.mxu2 }
 0x3b3   : > { %v1811_v0 = vrot.slane %v1810_v30, 4  ;;  %v1987_v60 = vadd.f32 %v1986_v26, %v4675_v2 }
 0x3b4   : > { %v2177_v45 = vpop.f32.mrf.mxu0 }
 0x3b5   : > { %v1812_v9 = vadd.f32 %v1811_v0, %v1810_v30  ;;  %v2112_v18 = vadd.f32 %v2111_v22, %v1987_v60 }
 0x3b7   : > { %v1813_v16 = vrot.slane %v1812_v9, 2  ;;  %v2178_v11 = vadd.f32 %v2177_v45, %v2112_v18 }
 0x3b8   : > { %v2115_v47 = vpop.f32.mrf.mxu3 }
 0x3b9   : > { %v1814_v12 = vadd.f32 %v1813_v16, %v1812_v9 }
 0x3ba   : > { %v1994_v44 = vpop.f32.mrf.mxu2  ;;  %v2231_v3 = vpop.f32.mrf.mxu1 }
 0x3bb   : > { %v1815_v15 = vrot.slane %v1814_v12, 1  ;;  %v1995_v58 = vadd.f32 %v1994_v44, %v4689_v52  ;;  %v2386_v52 = vld [vmem:[%s4955_s2] sm:$0xff]  ;;  %v2232_v2 = vadd.f32 %v2231_v3, %v2178_v11 }
 0x3bc   : > { %v2182_v35 = vpop.f32.mrf.mxu0 }
 0x3bd   : > { %v1816_v7 = vadd.f32 %v1815_v15, %v1814_v12  ;;  %v2116_v48 = vadd.f32 %v2115_v47, %v1995_v58 }
 0x3bf   : > { %v1818_v29 = vadd.f32 %v1817_v51, %v1816_v7  ;;  %v2183_v27 = vadd.f32 %v2182_v35, %v2116_v48  ;;  %v2388_v35 = vld [vmem:[%s4955_s2 + $0x10] sm:$0xff] }
 0x3c0   : > { %v2119_v40 = vpop.f32.mrf.mxu3 }
 0x3c1   : > { %v3461_v62 = vmul.f32 -1.442695, %v1818_v29 }
 0x3c2   : > { %v2002_v59 = vpop.f32.mrf.mxu2  ;;  %v2237_v1 = vpop.f32.mrf.mxu1 }
 0x3c3   : > { %3550 = vpow2.f32 %v3461_v62  ;;  %v2003_v41 = vadd.f32 %v2002_v59, %v4663_v10  ;;  %v2238_v30 = vadd.f32 %v2237_v1, %v2183_v27  ;;  %v2407_v62 = vsel %vm865_vm1, %v2386_v52, 0 }
 0x3c4   : > { %v2187_v5 = vpop.f32.mrf.mxu0 }
 0x3c5   : > { %v2120_v14 = vadd.f32 %v2119_v40, %v2003_v41 }
 0x3c7   : > { %v2188_v17 = vadd.f32 %v2187_v5, %v2120_v14  ;;  %v2413_v5 = vsel %vm865_vm1, %v2388_v35, 0 }
 0x3c8   : > { %v2123_v4 = vpop.f32.mrf.mxu3 }
 0x3c9   : > { %v3551_v42 = vpop.eup %3550 }
 0x3ca   : > { %v1822_v36 = vadd.f32 1.0, %v3551_v42  ;;  %v2010_v50 = vpop.f32.mrf.mxu2  ;;  %v2243_v61 = vpop.f32.mrf.mxu1 }
 0x3cb   : > { %v2011_v37 = vadd.f32 %v2010_v50, %v4677_v25  ;;  %v2244_v0 = vadd.f32 %v2243_v61, %v2188_v17 }
 0x3cc   : > { %3552 = vrcp.f32 %v1822_v36  ;;  %v1834_v56 = vand.u32 2147483648, %v1822_v36  ;;  %vm1828_vm2 = vweird.f32 %v1822_v36  ;;  %v1832_v55 = vand.u32 2147483647, %v1822_v36  ;;  %v2192_v16 = vpop.f32.mrf.mxu0 }
 0x3cd   : > { %v2124_v10 = vadd.f32 %v2123_v4, %v2011_v37  ;;  %v2389_v37 = vld [vmem:[%s4955_s2 + $0x18] sm:$0xff] }
 0x3ce   : > { %v1835_v8 = vor.u32 1.1754944e-38, %v1834_v56  ;;  %vm1833_vm6 = vcmp.eq.f32.partialorder %v1832_v55, 8.507059e+37 }
 0x3cf   : > { %v2193_v26 = vadd.f32 %v2192_v16, %v2124_v10  ;;  %v2416_v16 = vsel %vm865_vm1, %v2389_v37, 0 }
 0x3d2   : > { %v3553_v19 = vpop.eup %3552  ;;  %v2249_v25 = vpop.f32.mrf.mxu1 }
 0x3d3   : > { %v1824_v38 = vmul.f32 %v3553_v19, %v1822_v36  ;;  %vm1829_vm3 = vweird.f32 %v3553_v19  ;;  %v4748_v36 = vand.u32 4294901760, %v2407_v62 }
 0x3d4   : > { %vm1830_vm4 = vmor %vm1828_vm2, %vm1829_vm3 }
 0x3d5   : > { %v1825_v57 = vsub.f32 1.0, %v1824_v38  ;;  %v2250_v38 = vadd.f32 %v2249_v25, %v2193_v26  ;;  %v4754_v21 = vsub.f32 %v2407_v62, %v4748_v36 }
 0x3d7   : > { %v1826_v24 = vmul.f32 %v3553_v19, %v1825_v57 }
 0x3d9   : > { %v1827_v53 = vadd.f32 %v3553_v19, %v1826_v24 }
 0x3db   : > { %v1831_v20 = vsel %vm1830_vm4, %v3553_v19, %v1827_v53  ;;  %v2387_v19 = vld [vmem:[%s4955_s2 + $0x8] sm:$0xff] }
 0x3dc   : > { %v1836_v33 = vsel %vm1833_vm6, %v1835_v8, %v1831_v20  ;;  %v2410_v8 = vsel %vm865_vm1, %v2387_v19, 0 }
 0x3dd   : > { %1842 = vst.msk [vmem:[%s4735_s18] sm:$0x1] %vm4731_vm5, %v1836_v33  ;;  %v2440_v33 = vand.u32 4294901760, %v4754_v21  ;;  %v4762_v45 = vand.u32 4294901760, %v2410_v8 }
 0x3df   : > { %v2441_v58 = vsub.f32 %v4754_v21, %v2440_v33 }
 0x3f0   : > { %v2367_v63 = vpop.f32.mrf.mxu3 }
 0x3f2   : > { %v2318_v23 = vpop.f32.mrf.mxu2 }
 0x3f3   : > { %v2319_v15 = vadd.f32 %v2318_v23, %v2232_v2 }
 0x3f5   : > { %v2368_v44 = vadd.f32 %v2367_v63, %v2319_v15  ;;  %v4775_v63 = vsub.f32 %v2410_v8, %v4762_v45 }
 0x3f7   : > { %v2382_v24 = vmax.f32 %v2368_v44, 0.0  ;;  %v2448_v27 = vand.u32 4294901760, %v4775_v63 }
 0x3f8   : > { %v2371_v46 = vpop.f32.mrf.mxu3 }
 0x3f9   : > { %v4764_v3 = vand.u32 4294901760, %v2382_v24  ;;  %v2449_v2 = vsub.f32 %v4775_v63, %v2448_v27 }
 0x3fa   : > { %v2322_v43 = vpop.f32.mrf.mxu2 }
 0x3fb   : > { %v2323_v9 = vadd.f32 %v2322_v43, %v2238_v30  ;;  %v2502_v60 = vsub.f32 %v2382_v24, %v4764_v3  ;;  %v2442_v43 = vand.u32 4294901760, %v2441_v58  ;;  %v2450_v15 = vand.u32 4294901760, %v2449_v2 }
 0x3fd   : > { %v2372_v22 = vadd.f32 %v2371_v46, %v2323_v9  ;;  %v2454_v46 = vand.u32 4294901760, %v2413_v5  ;;  %v2503_v17 = vand.u32 4294901760, %v2502_v60 }
 0x3ff   : > { %v2383_v57 = vmax.f32 %v2372_v22, 0.0  ;;  %v2504_v9 = vsub.f32 %v2502_v60, %v2503_v17 }
 0x400   : > { %v2375_v29 = vpop.f32.mrf.mxu3 }
 0x401   : > { %v4759_v40 = vand.u32 4294901760, %v2383_v57  ;;  %v2505_v62 = vand.u32 4294901760, %v2504_v9 }
 0x402   : > { %v2326_v12 = vpop.f32.mrf.mxu2 }
 0x403   : > { %v2327_v7 = vadd.f32 %v2326_v12, %v2244_v0  ;;  %v2496_v1 = vsub.f32 %v2383_v57, %v4759_v40  ;;  %v2455_v0 = vsub.f32 %v2413_v5, %v2454_v46  ;;  %v2404_v5 = vpop.permute.xlu0 %2403 }
 0x405   : > { %v2376_v42 = vadd.f32 %v2375_v29, %v2327_v7  ;;  %v2497_v14 = vand.u32 4294901760, %v2496_v1  ;;  %v2456_v7 = vand.u32 4294901760, %v2455_v0  ;;  %v2462_v29 = vand.u32 4294901760, %v2416_v16 }
 0x407   : > { %v2384_v47 = vmax.f32 %v2376_v42, 0.0  ;;  %v2498_v52 = vsub.f32 %v2496_v1, %v2497_v14  ;;  %v2457_v26 = vsub.f32 %v2455_v0, %v2456_v7  ;;  %v2463_v22 = vsub.f32 %v2416_v16, %v2462_v29 }
 0x408   : > { %v2379_v59 = vpop.f32.mrf.mxu3 }
 0x409   : > { %v4756_v55 = vand.u32 4294901760, %v2384_v47  ;;  %v2499_v12 = vand.u32 4294901760, %v2498_v52  ;;  %v2458_v42 = vand.u32 4294901760, %v2457_v26  ;;  %v2464_v25 = vand.u32 4294901760, %v2463_v22 }
 0x40a   : > { %v2330_v56 = vpop.f32.mrf.mxu2 }
 0x40b   : > { %v2331_v53 = vadd.f32 %v2330_v56, %v2250_v38  ;;  %v2490_v50 = vsub.f32 %v2384_v47, %v4756_v55  ;;  %v2465_v44 = vsub.f32 %v2463_v22, %v2464_v25 }
 0x40d   : > { %v2380_v20 = vadd.f32 %v2379_v59, %v2331_v53  ;;  %v2491_v48 = vand.u32 4294901760, %v2490_v50 }
 0x40f   : > { %v2385_v4 = vmax.f32 %v2380_v20, 0.0  ;;  %v2492_v11 = vsub.f32 %v2490_v50, %v2491_v48 }
 0x411   : > { %v2430_v23 = vand.u32 4294901760, %v2385_v4  ;;  %v2493_v10 = vand.u32 4294901760, %v2492_v11 }
 0x413   : > { %v2484_v41 = vsub.f32 %v2385_v4, %v2430_v23  ;;  %2431 = vmatpush.msrb.mxu0 %v2430_v23  ;;  %2672 = vmatpush.msra.mxu3 %v2430_v23 }
 0x415   : > { %v2485_v18 = vand.u32 4294901760, %v2484_v41  ;;  %2433 = vmatpush.msrb.mxu0 %v4756_v55  ;;  %2674 = vmatpush.msra.mxu3 %v4756_v55 }
 0x417   : > { %v2486_v61 = vsub.f32 %v2484_v41, %v2485_v18  ;;  %2435 = vmatpush.msrb.mxu0 %v4759_v40  ;;  %2629 = vmatpush.msra.mxu2 %v2485_v18 }
 0x418   : > { %2676 = vmatpush.msra.mxu3 %v4759_v40 }
 0x419   : > { %2437 = vmatpush.msrb.mxu0 %v4764_v3  ;;  %2633 = vmatpush.msra.mxu2 %v2491_v48  ;;  %v2487_v30 = vand.u32 4294901760, %v2486_v61 }
 0x41a   : > { %2678 = vmatpush.msra.mxu3 %v4764_v3  ;;  %2443 = vmatmul.f32.vlgmr.msrb.gmra.mxu0 %v2442_v43 }
 0x41b   : > { %2538 = vmatpush.msra.mxu0 %v2484_v41  ;;  %2488 = vmatpush.msrb.mxu1 %v2487_v30 }
 0x41c   : > { %2637 = vmatpush.msra.mxu2 %v2497_v14  ;;  %2680 = vmatmul.f32.vlgmr.msra.gmra.mxu3 %v4748_v36 }
 0x41d   : > { %2541 = vmatpush.msra.mxu0 %v2490_v50  ;;  %2494 = vmatpush.msrb.mxu1 %v2493_v10 }
 0x41e   : > { %2641 = vmatpush.msra.mxu2 %v2503_v17 }
 0x41f   : > { %2544 = vmatpush.msra.mxu0 %v2496_v1  ;;  %2500 = vmatpush.msrb.mxu1 %v2499_v12 }
 0x420   : > { %2643 = vmatmul.f32.vlgmr.msra.gmra.mxu2 %v4748_v36 }
 0x421   : > { %2547 = vmatpush.msra.mxu0 %v2502_v60  ;;  %2506 = vmatpush.msrb.mxu1 %v2505_v62 }
 0x422   : > { %2451 = vmatmul.f32.gmra.mxu0 %v2450_v15  ;;  %2508 = vmatmul.f32.vlgmr.msrb.gmra.mxu1 %v4748_v36  ;;  %v2466_v36 = vand.u32 4294901760, %v2465_v44 }
 0x423   : > { %2582 = vmatpush.msra.mxu1 %v2430_v23 }
 0x424   : > { %2684 = vmatmul.f32.gmra.mxu3 %v4762_v45 }
 0x425   : > { %2584 = vmatpush.msra.mxu1 %v4756_v55 }
 0x427   : > { %2586 = vmatpush.msra.mxu1 %v4759_v40 }
 0x428   : > { %2647 = vmatmul.f32.gmra.mxu2 %v4762_v45 }
 0x429   : > { %2588 = vmatpush.msra.mxu1 %v4764_v3 }
 0x42a   : > { %2459 = vmatmul.f32.gmra.mxu0 %v2458_v42  ;;  %2512 = vmatmul.f32.gmra.mxu1 %v4762_v45 }
 0x42c   : > { %2688 = vmatmul.f32.gmra.mxu3 %v2454_v46 }
 0x430   : > { %2651 = vmatmul.f32.gmra.mxu2 %v2454_v46 }
 0x432   : > { %2467 = vmatmul.f32.gmra.mxu0 %v2466_v36  ;;  %2516 = vmatmul.f32.gmra.mxu1 %v2454_v46 }
 0x434   : > { %2692 = vmatmul.f32.gmra.mxu3 %v2462_v29 }
 0x438   : > { %2655 = vmatmul.f32.gmra.mxu2 %v2462_v29 }
 0x43a   : > { %2520 = vmatmul.f32.gmra.mxu1 %v2462_v29  ;;  %2550 = vmatmul.f32.vlgmr.msra.gmra.mxu0 %v4754_v21  ;;  %v2701_v29 = vld [vmem:[%s4956_s3 + $0x8] sm:$0xff] }
 0x442   : > { %2555 = vmatmul.f32.gmra.mxu0 %v4775_v63  ;;  %2592 = vmatmul.f32.vlgmr.msra.gmra.mxu1 %v2440_v33 }
 0x44a   : > { %2560 = vmatmul.f32.gmra.mxu0 %v2455_v0  ;;  %2598 = vmatmul.f32.gmra.mxu1 %v2448_v27 }
 0x452   : > { %2565 = vmatmul.f32.gmra.mxu0 %v2463_v22  ;;  %2604 = vmatmul.f32.gmra.mxu1 %v2456_v7 }
 0x45a   : > { %2610 = vmatmul.f32.gmra.mxu1 %v2464_v25 }
 0x497   : > { %v2444_v47 = vpop.f32.mrf.mxu0 }
 0x498   : > { %v2445_v50 = vadd.f32 %v2444_v47, %v4709_v6  ;;  %v2724_v47 = vsel %vm865_vm1, %v2701_v29, 0 }
 0x49f   : > { %v2452_v19 = vpop.f32.mrf.mxu0  ;;  %v2509_v38 = vpop.f32.mrf.mxu1 }
 0x4a0   : > { %v2681_v40 = vpop.f32.mrf.mxu3  ;;  %v2453_v45 = vadd.f32 %v2452_v19, %v4685_v39  ;;  %v2510_v58 = vadd.f32 %v2509_v38, %v2445_v50  ;;  %v2700_v39 = vld [vmem:[%s4956_s3] sm:$0xff] }
 0x4a1   : > { %v2721_v37 = vsel %vm865_vm1, %v2700_v39, 0 }
 0x4a2   : > { %v4815_v10 = vand.u32 4294901760, %v2721_v37 }
 0x4a3   : > { %v2644_v8 = vpop.f32.mrf.mxu2 }
 0x4a4   : > { %v2753_v42 = vsub.f32 %v2721_v37, %v4815_v10 }
 0x4a7   : > { %v2460_v57 = vpop.f32.mrf.mxu0  ;;  %v2513_v56 = vpop.f32.mrf.mxu1 }
 0x4a8   : > { %v2685_v3 = vpop.f32.mrf.mxu3  ;;  %v2461_v35 = vadd.f32 %v2460_v57, %v4700_v49  ;;  %v2514_v1 = vadd.f32 %v2513_v56, %v2453_v45  ;;  %v2754_v57 = vand.u32 4294901760, %v2753_v42  ;;  %v4826_v56 = vand.u32 4294901760, %v2724_v47 }
 0x4ab   : > { %v2648_v33 = vpop.f32.mrf.mxu2 }
 0x4af   : > { %v2468_v24 = vpop.f32.mrf.mxu0  ;;  %v2517_v55 = vpop.f32.mrf.mxu1 }
 0x4b0   : > { %v2518_v60 = vadd.f32 %v2517_v55, %v2461_v35  ;;  %v2689_v46 = vpop.f32.mrf.mxu3  ;;  %v2469_v6 = vadd.f32 %v2468_v24, %v2404_v5 }
 0x4b3   : > { %v2652_v18 = vpop.f32.mrf.mxu2 }
 0x4b7   : > { %v2521_v53 = vpop.f32.mrf.mxu1  ;;  %v2551_v59 = vpop.f32.mrf.mxu0 }
 0x4b8   : > { %v2552_v41 = vadd.f32 %v2551_v59, %v2510_v58  ;;  %v2522_v52 = vadd.f32 %v2521_v53, %v2469_v6  ;;  %v2693_v22 = vpop.f32.mrf.mxu3  ;;  %v2702_v59 = vld [vmem:[%s4956_s3 + $0x10] sm:$0xff] }
 0x4b9   : > { %v2727_v50 = vsel %vm865_vm1, %v2702_v59, 0 }
 0x4ba   : > { %v4840_v58 = vand.u32 4294901760, %v2727_v50 }
 0x4bb   : > { %v2656_v7 = vpop.f32.mrf.mxu2 }
 0x4bf   : > { %v2556_v21 = vpop.f32.mrf.mxu0  ;;  %v2593_v20 = vpop.f32.mrf.mxu1 }
 0x4c0   : > { %v2557_v63 = vadd.f32 %v2556_v21, %v2514_v1  ;;  %v2594_v14 = vadd.f32 %v2593_v20, %v2552_v41  ;;  %v2755_v21 = vsub.f32 %v2753_v42, %v2754_v57  ;;  %v2761_v20 = vsub.f32 %v2724_v47, %v4826_v56  ;;  %v2714_v47 = vpop.permute.xlu0 %2713 }
 0x4c2   : > { %v2645_v11 = vadd.f32 %v2644_v8, %v2594_v14  ;;  %v2756_v1 = vand.u32 4294901760, %v2755_v21 }
 0x4c4   : > { %v2682_v9 = vadd.f32 %v2681_v40, %v2645_v11 }
 0x4c6   : > { %v2696_v25 = vmax.f32 %v2682_v9, 0.0 }
 0x4c7   : > { %v2599_v4 = vpop.f32.mrf.mxu1  ;;  %v2561_v23 = vpop.f32.mrf.mxu0 }
 0x4c8   : > { %v2600_v48 = vadd.f32 %v2599_v4, %v2557_v63  ;;  %v2562_v43 = vadd.f32 %v2561_v23, %v2518_v60  ;;  %v4828_v24 = vand.u32 4294901760, %v2696_v25  ;;  %v2762_v23 = vand.u32 4294901760, %v2761_v20 }
 0x4ca   : > { %v2649_v61 = vadd.f32 %v2648_v33, %v2600_v48  ;;  %v2816_v33 = vsub.f32 %v2696_v25, %v4828_v24  ;;  %v2703_v48 = vld [vmem:[%s4956_s3 + $0x18] sm:$0xff]  ;;  %v2763_v14 = vsub.f32 %v2761_v20, %v2762_v23 }
 0x4cb   : > { %v2730_v39 = vsel %vm865_vm1, %v2703_v48, 0 }
 0x4cc   : > { %v2686_v2 = vadd.f32 %v2685_v3, %v2649_v61  ;;  %v2817_v41 = vand.u32 4294901760, %v2816_v33  ;;  %v2764_v61 = vand.u32 4294901760, %v2763_v14  ;;  %v2776_v11 = vand.u32 4294901760, %v2730_v39 }
 0x4ce   : > { %v2697_v62 = vmax.f32 %v2686_v2, 0.0 }
 0x4cf   : > { %v2605_v27 = vpop.f32.mrf.mxu1  ;;  %v2566_v30 = vpop.f32.mrf.mxu0 }
 0x4d0   : > { %v2606_v49 = vadd.f32 %v2605_v27, %v2562_v43  ;;  %v2567_v16 = vadd.f32 %v2566_v30, %v2522_v52  ;;  %v4824_v19 = vand.u32 4294901760, %v2697_v62  ;;  %v2769_v43 = vsub.f32 %v2727_v50, %v4840_v58 }
 0x4d1   : > { %v2777_v30 = vsub.f32 %v2730_v39, %v2776_v11 }
 0x4d2   : > { %v2653_v17 = vadd.f32 %v2652_v18, %v2606_v49  ;;  %v2810_v8 = vsub.f32 %v2697_v62, %v4824_v19  ;;  %v2770_v49 = vand.u32 4294901760, %v2769_v43 }
 0x4d3   : > { %v2778_v2 = vand.u32 4294901760, %v2777_v30 }
 0x4d4   : > { %v2690_v0 = vadd.f32 %v2689_v46, %v2653_v17  ;;  %v2811_v35 = vand.u32 4294901760, %v2810_v8  ;;  %v2818_v46 = vsub.f32 %v2816_v33, %v2817_v41  ;;  %v2771_v37 = vsub.f32 %v2769_v43, %v2770_v49 }
 0x4d6   : > { %v2698_v12 = vmax.f32 %v2690_v0, 0.0  ;;  %v2812_v18 = vsub.f32 %v2810_v8, %v2811_v35  ;;  %v2819_v17 = vand.u32 4294901760, %v2818_v46  ;;  %v2772_v52 = vand.u32 4294901760, %v2771_v37  ;;  %v3015_v37 = vld [vmem:[%s4957_s4 + $0x8] sm:$0xff] }
 0x4d7   : > { %v2611_v15 = vpop.f32.mrf.mxu1  ;;  %v2779_v0 = vsub.f32 %v2777_v30, %v2778_v2 }
 0x4d8   : > { %v2612_v26 = vadd.f32 %v2611_v15, %v2567_v16  ;;  %v4821_v44 = vand.u32 4294901760, %v2698_v12  ;;  %v2813_v6 = vand.u32 4294901760, %v2812_v18 }
 0x4d9   : > { %v2780_v9 = vand.u32 4294901760, %v2779_v0 }
 0x4da   : > { %v2657_v36 = vadd.f32 %v2656_v7, %v2612_v26  ;;  %v2804_v55 = vsub.f32 %v2698_v12, %v4821_v44 }
 0x4dc   : > { %v2694_v38 = vadd.f32 %v2693_v22, %v2657_v36  ;;  %v2805_v3 = vand.u32 4294901760, %v2804_v55 }
 0x4de   : > { %v2699_v53 = vmax.f32 %v2694_v38, 0.0  ;;  %v2806_v60 = vsub.f32 %v2804_v55, %v2805_v3 }
 0x4e0   : > { %v2744_v40 = vand.u32 4294901760, %v2699_v53  ;;  %v2807_v27 = vand.u32 4294901760, %v2806_v60 }
 0x4e2   : > { %v2798_v45 = vsub.f32 %v2699_v53, %v2744_v40  ;;  %2745 = vmatpush.msrb.mxu0 %v2744_v40  ;;  %2896 = vmatpush.msrb.mxu3 %v2744_v40 }
 0x4e4   : > { %v2799_v4 = vand.u32 4294901760, %v2798_v45  ;;  %2747 = vmatpush.msrb.mxu0 %v4821_v44  ;;  %2852 = vmatpush.msrb.mxu2 %v2798_v45 }
 0x4e5   : > { %2898 = vmatpush.msrb.mxu3 %v4821_v44 }
 0x4e6   : > { %v2800_v63 = vsub.f32 %v2798_v45, %v2799_v4  ;;  %2749 = vmatpush.msrb.mxu0 %v4824_v19  ;;  %2855 = vmatpush.msrb.mxu2 %v2804_v55 }
 0x4e7   : > { %2900 = vmatpush.msrb.mxu3 %v4824_v19 }
 0x4e8   : > { %2751 = vmatpush.msrb.mxu0 %v4828_v24  ;;  %2858 = vmatpush.msrb.mxu2 %v2810_v8  ;;  %v2801_v5 = vand.u32 4294901760, %v2800_v63 }
 0x4e9   : > { %2902 = vmatpush.msrb.mxu3 %v4828_v24  ;;  %2757 = vmatmul.f32.vlgmr.msrb.gmra.mxu0 %v2756_v1 }
 0x4ea   : > { %2943 = vmatpush.msra.mxu0 %v2799_v4  ;;  %2802 = vmatpush.msrb.mxu1 %v2801_v5 }
 0x4eb   : > { %2861 = vmatpush.msrb.mxu2 %v2816_v33  ;;  %2906 = vmatmul.f32.vlgmr.msrb.gmra.mxu3 %v2754_v57 }
 0x4ec   : > { %2947 = vmatpush.msra.mxu0 %v2805_v3  ;;  %2808 = vmatpush.msrb.mxu1 %v2807_v27 }
 0x4ed   : > { %2864 = vmatmul.f32.vlgmr.msrb.gmra.mxu2 %v2753_v42 }
 0x4ee   : > { %2951 = vmatpush.msra.mxu0 %v2811_v35  ;;  %2814 = vmatpush.msrb.mxu1 %v2813_v6 }
 0x4f0   : > { %2955 = vmatpush.msra.mxu0 %v2817_v41  ;;  %2820 = vmatpush.msrb.mxu1 %v2819_v17 }
 0x4f1   : > { %2765 = vmatmul.f32.gmra.mxu0 %v2764_v61  ;;  %2822 = vmatmul.f32.vlgmr.msrb.gmra.mxu1 %v4815_v10 }
 0x4f2   : > { %2986 = vmatpush.msra.mxu1 %v2744_v40 }
 0x4f3   : > { %2912 = vmatmul.f32.gmra.mxu3 %v2762_v23 }
 0x4f4   : > { %2988 = vmatpush.msra.mxu1 %v4821_v44 }
 0x4f5   : > { %2869 = vmatmul.f32.gmra.mxu2 %v2761_v20 }
 0x4f6   : > { %2990 = vmatpush.msra.mxu1 %v4824_v19 }
 0x4f8   : > { %2992 = vmatpush.msra.mxu1 %v4828_v24 }
 0x4f9   : > { %2773 = vmatmul.f32.gmra.mxu0 %v2772_v52  ;;  %2826 = vmatmul.f32.gmra.mxu1 %v4826_v56 }
 0x4fb   : > { %2918 = vmatmul.f32.gmra.mxu3 %v2770_v49 }
 0x4fd   : > { %2874 = vmatmul.f32.gmra.mxu2 %v2769_v43 }
 0x501   : > { %2781 = vmatmul.f32.gmra.mxu0 %v2780_v9  ;;  %2830 = vmatmul.f32.gmra.mxu1 %v4840_v58  ;;  %v3038_v9 = vsel %vm865_vm1, %v3015_v37, 0 }
 0x503   : > { %2924 = vmatmul.f32.gmra.mxu3 %v2778_v2 }
 0x505   : > { %2879 = vmatmul.f32.gmra.mxu2 %v2777_v30 }
 0x509   : > { %2834 = vmatmul.f32.gmra.mxu1 %v2776_v11  ;;  %2957 = vmatmul.f32.vlgmr.msra.gmra.mxu0 %v4815_v10 }
 0x511   : > { %2961 = vmatmul.f32.gmra.mxu0 %v4826_v56  ;;  %2994 = vmatmul.f32.vlgmr.msra.gmra.mxu1 %v4815_v10 }
 0x519   : > { %2965 = vmatmul.f32.gmra.mxu0 %v4840_v58  ;;  %2998 = vmatmul.f32.gmra.mxu1 %v4826_v56 }
 0x521   : > { %2969 = vmatmul.f32.gmra.mxu0 %v2776_v11  ;;  %3002 = vmatmul.f32.gmra.mxu1 %v4840_v58 }
 0x529   : > { %3006 = vmatmul.f32.gmra.mxu1 %v2776_v11 }
 0x566   : > { %v2758_v16 = vpop.f32.mrf.mxu0 }
 0x567   : > { %v2759_v24 = vadd.f32 %v2758_v16, %v4707_v13  ;;  %v3014_v13 = vld [vmem:[%s4957_s4] sm:$0xff] }
 0x56e   : > { %v2766_v12 = vpop.f32.mrf.mxu0  ;;  %v2823_v15 = vpop.f32.mrf.mxu1 }
 0x56f   : > { %v2907_v42 = vpop.f32.mrf.mxu3  ;;  %v2767_v57 = vadd.f32 %v2766_v12, %v4713_v34  ;;  %v2824_v8 = vadd.f32 %v2823_v15, %v2759_v24 }
 0x570   : > { %v2865_v62 = vpop.f32.mrf.mxu2 }
 0x571   : > { %v2866_v3 = vadd.f32 %v2865_v62, %v2824_v8 }
 0x573   : > { %v2908_v23 = vadd.f32 %v2907_v42, %v2866_v3 }
 0x576   : > { %v2774_v7 = vpop.f32.mrf.mxu0  ;;  %v2827_v29 = vpop.f32.mrf.mxu1 }
 0x577   : > { %v2913_v36 = vpop.f32.mrf.mxu3  ;;  %v2775_v56 = vadd.f32 %v2774_v7, %v2714_v47  ;;  %v2828_v53 = vadd.f32 %v2827_v29, %v2767_v57 }
 0x578   : > { %v2870_v10 = vpop.f32.mrf.mxu2 }
 0x579   : > { %v2871_v20 = vadd.f32 %v2870_v10, %v2828_v53 }
 0x57b   : > { %v2914_v4 = vadd.f32 %v2913_v36, %v2871_v20 }
 0x57e   : > { %v2782_v26 = vpop.f32.mrf.mxu0  ;;  %v2831_v22 = vpop.f32.mrf.mxu1 }
 0x57f   : > { %v2832_v59 = vadd.f32 %v2831_v22, %v2775_v56  ;;  %v2919_v40 = vpop.f32.mrf.mxu3  ;;  %v2783_v33 = vadd.f32 %v2782_v26, %v4698_v54  ;;  %v3035_v54 = vsel %vm865_vm1, %v3014_v13, 0  ;;  %v4885_v26 = vand.u32 4294901760, %v3038_v9 }
 0x580   : > { %v2875_v55 = vpop.f32.mrf.mxu2  ;;  %v4870_v39 = vand.u32 4294901760, %v3035_v54 }
 0x581   : > { %v2876_v45 = vadd.f32 %v2875_v55, %v2832_v59 }
 0x582   : > { %v3067_v52 = vsub.f32 %v3035_v54, %v4870_v39 }
 0x583   : > { %v2920_v35 = vadd.f32 %v2919_v40, %v2876_v45 }
 0x584   : > { %v3068_v7 = vand.u32 4294901760, %v3067_v52 }
 0x586   : > { %v2835_v25 = vpop.f32.mrf.mxu1  ;;  %v2958_v44 = vpop.f32.mrf.mxu0  ;;  %v3069_v10 = vsub.f32 %v3067_v52, %v3068_v7 }
 0x587   : > { %v2836_v1 = vadd.f32 %v2835_v25, %v2783_v33  ;;  %v2959_v60 = vadd.f32 %v2958_v44, %v2908_v23  ;;  %v2925_v14 = vpop.f32.mrf.mxu3  ;;  %v3016_v44 = vld [vmem:[%s4957_s4 + $0x10] sm:$0xff]  ;;  %v3017_v33 = vld [vmem:[%s4957_s4 + $0x18] sm:$0xff] }
 0x588   : > { %v2880_v34 = vpop.f32.mrf.mxu2  ;;  %v3070_v55 = vand.u32 4294901760, %v3069_v10 }
 0x589   : > { %v2881_v48 = vadd.f32 %v2880_v34, %v2836_v1 }
 0x58b   : > { %v2926_v6 = vadd.f32 %v2925_v14, %v2881_v48 }
 0x58e   : > { %v2962_v19 = vpop.f32.mrf.mxu0  ;;  %v2995_v38 = vpop.f32.mrf.mxu1 }
 0x58f   : > { %v2963_v58 = vadd.f32 %v2962_v19, %v2914_v4  ;;  %v2996_v43 = vadd.f32 %v2995_v38, %v2959_v60  ;;  %v3075_v19 = vsub.f32 %v3038_v9, %v4885_v26  ;;  %v3041_v38 = vsel %vm865_vm1, %v3016_v44, 0 }
 0x590   : > { %v3082_v40 = vand.u32 4294901760, %v3041_v38  ;;  %v3044_v4 = vsel %vm865_vm1, %v3017_v33, 0 }
 0x591   : > { %v3010_v49 = vmax.f32 %v2996_v43, 0.0  ;;  %v3076_v8 = vand.u32 4294901760, %v3075_v19  ;;  %v3090_v34 = vand.u32 4294901760, %v3044_v4 }
 0x593   : > { %v4881_v16 = vand.u32 4294901760, %v3010_v49  ;;  %v3077_v3 = vsub.f32 %v3075_v19, %v3076_v8 }
 0x595   : > { %v3130_v22 = vsub.f32 %v3010_v49, %v4881_v16  ;;  %v3078_v1 = vand.u32 4294901760, %v3077_v3 }
 0x596   : > { %v2999_v21 = vpop.f32.mrf.mxu1  ;;  %v2966_v50 = vpop.f32.mrf.mxu0 }
 0x597   : > { %v2967_v63 = vadd.f32 %v2966_v50, %v2920_v35  ;;  %v3000_v5 = vadd.f32 %v2999_v21, %v2963_v58  ;;  %v3131_v24 = vand.u32 4294901760, %v3130_v22  ;;  %v3083_v50 = vsub.f32 %v3041_v38, %v3082_v40 }
 0x598   : > { %v3091_v58 = vsub.f32 %v3044_v4, %v3090_v34 }
 0x599   : > { %v3011_v61 = vmax.f32 %v3000_v5, 0.0  ;;  %v3132_v20 = vsub.f32 %v3130_v22, %v3131_v24  ;;  %v3084_v23 = vand.u32 4294901760, %v3083_v50 }
 0x59a   : > { %v3092_v60 = vand.u32 4294901760, %v3091_v58 }
 0x59b   : > { %v4878_v2 = vand.u32 4294901760, %v3011_v61  ;;  %v3133_v35 = vand.u32 4294901760, %v3132_v20  ;;  %v3085_v13 = vsub.f32 %v3083_v50, %v3084_v23 }
 0x59d   : > { %v3124_v29 = vsub.f32 %v3011_v61, %v4878_v2 }
 0x59e   : > { %v3003_v41 = vpop.f32.mrf.mxu1  ;;  %v2970_v46 = vpop.f32.mrf.mxu0 }
 0x59f   : > { %v3004_v18 = vadd.f32 %v3003_v41, %v2967_v63  ;;  %v2971_v11 = vadd.f32 %v2970_v46, %v2926_v6  ;;  %v3125_v47 = vand.u32 4294901760, %v3124_v29  ;;  %v3086_v63 = vand.u32 4294901760, %v3085_v13 }
 0x5a0   : > { %v3093_v41 = vsub.f32 %v3091_v58, %v3092_v60 }
 0x5a1   : > { %v3012_v27 = vmax.f32 %v3004_v18, 0.0  ;;  %v3126_v59 = vsub.f32 %v3124_v29, %v3125_v47 }
 0x5a2   : > { %v3094_v48 = vand.u32 4294901760, %v3093_v41 }
 0x5a3   : > { %v4872_v17 = vand.u32 4294901760, %v3012_v27  ;;  %v3127_v45 = vand.u32 4294901760, %v3126_v59 }
 0x5a5   : > { %v3118_v12 = vsub.f32 %v3012_v27, %v4872_v17 }
 0x5a6   : > { %v3007_v30 = vpop.f32.mrf.mxu1 }
 0x5a7   : > { %v3008_v0 = vadd.f32 %v3007_v30, %v2971_v11  ;;  %v3119_v25 = vand.u32 4294901760, %v3118_v12 }
 0x5a9   : > { %v3013_v15 = vmax.f32 %v3008_v0, 0.0  ;;  %v3120_v56 = vsub.f32 %v3118_v12, %v3119_v25 }
 0x5ab   : > { %v3058_v62 = vand.u32 4294901760, %v3013_v15  ;;  %v3121_v21 = vand.u32 4294901760, %v3120_v56 }
 0x5ad   : > { %v3112_v42 = vsub.f32 %v3013_v15, %v3058_v62  ;;  %3059 = vmatpush.msra.mxu2 %v3058_v62  ;;  %3210 = vmatpush.msrb.mxu1 %v3058_v62 }
 0x5af   : > { %v3113_v36 = vand.u32 4294901760, %v3112_v42  ;;  %3061 = vmatpush.msra.mxu2 %v4872_v17  ;;  %3166 = vmatpush.msrb.mxu0 %v3112_v42 }
 0x5b0   : > { %3212 = vmatpush.msrb.mxu1 %v4872_v17 }
 0x5b1   : > { %v3114_v57 = vsub.f32 %v3112_v42, %v3113_v36  ;;  %3063 = vmatpush.msra.mxu2 %v4878_v2  ;;  %3169 = vmatpush.msrb.mxu0 %v3118_v12 }
 0x5b2   : > { %3214 = vmatpush.msrb.mxu1 %v4878_v2 }
 0x5b3   : > { %3065 = vmatpush.msra.mxu2 %v4881_v16  ;;  %3172 = vmatpush.msrb.mxu0 %v3124_v29  ;;  %v3115_v53 = vand.u32 4294901760, %v3114_v57 }
 0x5b4   : > { %3216 = vmatpush.msrb.mxu1 %v4881_v16  ;;  %3071 = vmatmul.f32.vlgmr.msra.gmra.mxu2 %v3070_v55 }
 0x5b5   : > { %3257 = vmatpush.msrb.mxu2 %v3113_v36  ;;  %3116 = vmatpush.msra.mxu3 %v3115_v53 }
 0x5b6   : > { %3175 = vmatpush.msrb.mxu0 %v3130_v22  ;;  %3220 = vmatmul.f32.vlgmr.msrb.gmra.mxu1 %v3068_v7 }
 0x5b7   : > { %3261 = vmatpush.msrb.mxu2 %v3119_v25  ;;  %3178 = vmatmul.f32.vlgmr.msrb.gmra.mxu0 %v3067_v52 }
 0x5b8   : > { %3122 = vmatpush.msra.mxu3 %v3121_v21 }
 0x5b9   : > { %3265 = vmatpush.msrb.mxu2 %v3125_v47 }
 0x5ba   : > { %3128 = vmatpush.msra.mxu3 %v3127_v45 }
 0x5bb   : > { %3269 = vmatpush.msrb.mxu2 %v3131_v24 }
 0x5bc   : > { %3134 = vmatpush.msra.mxu3 %v3133_v35  ;;  %3079 = vmatmul.f32.gmra.mxu2 %v3078_v1 }
 0x5bd   : > { %3136 = vmatmul.f32.vlgmr.msra.gmra.mxu3 %v4870_v39 }
 0x5be   : > { %3300 = vmatpush.msrb.mxu3 %v3058_v62  ;;  %3226 = vmatmul.f32.gmra.mxu1 %v3076_v8 }
 0x5bf   : > { %3183 = vmatmul.f32.gmra.mxu0 %v3075_v19 }
 0x5c0   : > { %3302 = vmatpush.msrb.mxu3 %v4872_v17  ;;  %v3020_v17 = vpop.permute.xlu0 %3019 }
 0x5c2   : > { %3304 = vmatpush.msrb.mxu3 %v4878_v2 }
 0x5c4   : > { %3306 = vmatpush.msrb.mxu3 %v4881_v16  ;;  %3087 = vmatmul.f32.gmra.mxu2 %v3086_v63 }
 0x5c5   : > { %3140 = vmatmul.f32.gmra.mxu3 %v4885_v26 }
 0x5c6   : > { %3232 = vmatmul.f32.gmra.mxu1 %v3084_v23 }
 0x5c7   : > { %3188 = vmatmul.f32.gmra.mxu0 %v3083_v50 }
 0x5c8   : > { %v3032_v29 = vpop.permute.xlu0 %3031 }
 0x5cc   : > { %3095 = vmatmul.f32.gmra.mxu2 %v3094_v48 }
 0x5cd   : > { %3144 = vmatmul.f32.gmra.mxu3 %v3082_v40 }
 0x5ce   : > { %3238 = vmatmul.f32.gmra.mxu1 %v3092_v60 }
 0x5cf   : > { %3193 = vmatmul.f32.gmra.mxu0 %v3091_v58 }
 0x5d0   : > { %v3330_v33 = vpop.permute.xlu0 %3329 }
 0x5d4   : > { %3271 = vmatmul.f32.vlgmr.msrb.gmra.mxu2 %v4870_v39 }
 0x5d5   : > { %3148 = vmatmul.f32.gmra.mxu3 %v3090_v34 }
 0x5d8   : > { %v3342_v48 = vpop.permute.xlu0 %3341 }
 0x5dc   : > { %3275 = vmatmul.f32.gmra.mxu2 %v4885_v26 }
 0x5dd   : > { %3308 = vmatmul.f32.vlgmr.msrb.gmra.mxu3 %v4870_v39 }
 0x5e4   : > { %3279 = vmatmul.f32.gmra.mxu2 %v3082_v40 }
 0x5e5   : > { %3312 = vmatmul.f32.gmra.mxu3 %v4885_v26 }
 0x5ec   : > { %3283 = vmatmul.f32.gmra.mxu2 %v3090_v34 }
 0x5ed   : > { %3316 = vmatmul.f32.gmra.mxu3 %v3082_v40 }
 0x5f5   : > { %3320 = vmatmul.f32.gmra.mxu3 %v3090_v34 }
 0x633   : > { %v3221_v61 = vpop.f32.mrf.mxu1 }
 0x634   : > { %v3179_v46 = vpop.f32.mrf.mxu0 }
 0x637   : > { %v3072_v5 = vpop.f32.mrf.mxu2 }
 0x638   : > { %v3073_v0 = vadd.f32 %v3072_v5, %v3020_v17 }
 0x63b   : > { %v3227_v37 = vpop.f32.mrf.mxu1 }
 0x63c   : > { %v3184_v11 = vpop.f32.mrf.mxu0 }
 0x63f   : > { %v3080_v54 = vpop.f32.mrf.mxu2 }
 0x640   : > { %v3137_v18 = vpop.f32.mrf.mxu3  ;;  %v3081_v30 = vadd.f32 %v3080_v54, %v4719_v28 }
 0x641   : > { %v3138_v7 = vadd.f32 %v3137_v18, %v3073_v0 }
 0x643   : > { %v3233_v22 = vpop.f32.mrf.mxu1  ;;  %v3180_v42 = vadd.f32 %v3179_v46, %v3138_v7 }
 0x644   : > { %v3189_v12 = vpop.f32.mrf.mxu0 }
 0x645   : > { %v3222_v47 = vadd.f32 %v3221_v61, %v3180_v42 }
 0x647   : > { %v3088_v43 = vpop.f32.mrf.mxu2 }
 0x648   : > { %v3141_v14 = vpop.f32.mrf.mxu3  ;;  %v3089_v2 = vadd.f32 %v3088_v43, %v4721_v32  ;;  %v3334_v32 = vpop.permute.xlu1 %3333 }
 0x649   : > { %v3142_v9 = vadd.f32 %v3141_v14, %v3081_v30 }
 0x64b   : > { %v3185_v62 = vadd.f32 %v3184_v11, %v3142_v9  ;;  %v3239_v21 = vpop.f32.mrf.mxu1 }
 0x64c   : > { %v3194_v57 = vpop.f32.mrf.mxu0 }
 0x64d   : > { %v3228_v10 = vadd.f32 %v3227_v37, %v3185_v62 }
 0x64f   : > { %v3096_v6 = vpop.f32.mrf.mxu2 }
 0x650   : > { %v3145_v27 = vpop.f32.mrf.mxu3  ;;  %v3097_v25 = vadd.f32 %v3096_v6, %v3032_v29  ;;  %v3338_v23 = vpop.permute.xlu1 %3337 }
 0x651   : > { %v3146_v15 = vadd.f32 %v3145_v27, %v3089_v2 }
 0x653   : > { %v3190_v44 = vadd.f32 %v3189_v12, %v3146_v15 }
 0x655   : > { %v3234_v19 = vadd.f32 %v3233_v22, %v3190_v44 }
 0x657   : > { %v3272_v39 = vpop.f32.mrf.mxu2 }
 0x658   : > { %v3149_v49 = vpop.f32.mrf.mxu3  ;;  %v3273_v56 = vadd.f32 %v3272_v39, %v3222_v47 }
 0x659   : > { %v3150_v38 = vadd.f32 %v3149_v49, %v3097_v25 }
 0x65b   : > { %v3195_v40 = vadd.f32 %v3194_v57, %v3150_v38 }
 0x65d   : > { %v3240_v4 = vadd.f32 %v3239_v21, %v3195_v40 }
 0x65f   : > { %v3276_v16 = vpop.f32.mrf.mxu2 }
 0x660   : > { %v3309_v52 = vpop.f32.mrf.mxu3  ;;  %v3277_v28 = vadd.f32 %v3276_v16, %v3228_v10 }
 0x661   : > { %v3310_v59 = vadd.f32 %v3309_v52, %v3273_v56 }
 0x663   : > { %v3324_v3 = vmax.f32 %v3310_v59, 0.0 }
 0x665   : > { %v3344_v13 = vmul.f32 %v3330_v33, %v3324_v3 }
 0x667   : > { %v3280_v36 = vpop.f32.mrf.mxu2 }
 0x668   : > { %v3313_v26 = vpop.f32.mrf.mxu3  ;;  %v3281_v55 = vadd.f32 %v3280_v36, %v3234_v19 }
 0x669   : > { %v3314_v24 = vadd.f32 %v3313_v26, %v3277_v28 }
 0x66b   : > { %v3325_v20 = vmax.f32 %v3314_v24, 0.0 }
 0x66d   : > { %v3345_v35 = vmul.f32 %v3334_v32, %v3325_v20 }
 0x66f   : > { %v3284_v45 = vpop.f32.mrf.mxu2  ;;  %v3348_v60 = vadd.f32 %v3345_v35, %v3344_v13 }
 0x670   : > { %v3317_v53 = vpop.f32.mrf.mxu3  ;;  %v3285_v1 = vadd.f32 %v3284_v45, %v3240_v4 }
 0x671   : > { %v3318_v8 = vadd.f32 %v3317_v53, %v3281_v55 }
 0x673   : > { %v3326_v50 = vmax.f32 %v3318_v8, 0.0 }
 0x675   : > { %v3346_v58 = vmul.f32 %v3338_v23, %v3326_v50 }
 0x677   : > { %v3349_v5 = vadd.f32 %v3348_v60, %v3346_v58 }
 0x678   : > { %v3321_v34 = vpop.f32.mrf.mxu3 }
 0x679   : > { %v3322_v63 = vadd.f32 %v3321_v34, %v3285_v1 }
 0x67b   : > { %v3327_v41 = vmax.f32 %v3322_v63, 0.0 }
 0x67d   : > { %v3347_v18 = vmul.f32 %v3342_v48, %v3327_v41 }
 0x67f   : > { %v3350_v54 = vadd.f32 %v3349_v5, %v3347_v18 }
 0x681   : > { %v3351_v14 = vrot.slane %v3350_v54, 4 }
 0x683   : > { %v3352_v43 = vadd.f32 %v3351_v14, %v3350_v54 }
 0x685   : > { %v3353_v27 = vrot.slane %v3352_v43, 2 }
 0x687   : > { %v3354_v46 = vadd.f32 %v3353_v27, %v3352_v43 }
 0x689   : > { %v3355_v6 = vrot.slane %v3354_v46, 1 }
 0x68b   : > { %v3356_v61 = vadd.f32 %v3355_v6, %v3354_v46 }
 0x68d   : > { %v3357_v49 = vadd.f32 %v3356_v61, %v1817_v51 }
 0x68f   : > { %v3478_v11 = vmul.f32 -1.442695, %v3357_v49 }
 0x691   : > { %3554 = vpow2.f32 %v3478_v11 }
 0x697   : > { %v3555_v39 = vpop.eup %3554 }
 0x698   : > { %v3361_v17 = vadd.f32 1.0, %v3555_v39 }
 0x69a   : > { %3556 = vrcp.f32 %v3361_v17  ;;  %v3373_v2 = vand.u32 2147483648, %v3361_v17  ;;  %v3371_v9 = vand.u32 2147483647, %v3361_v17  ;;  %vm3367_vm8 = vweird.f32 %v3361_v17 }
 0x69c   : > { %v3374_v16 = vor.u32 1.1754944e-38, %v3373_v2  ;;  %vm3372_vm10 = vcmp.eq.f32.partialorder %v3371_v9, 8.507059e+37 }
 0x6a0   : > { %v3557_v37 = vpop.eup %3556 }
 0x6a1   : > { %v3363_v30 = vmul.f32 %v3557_v37, %v3361_v17  ;;  %vm3368_vm7 = vweird.f32 %v3557_v37 }
 0x6a2   : > { %vm3369_vm9 = vmor %vm3367_vm8, %vm3368_vm7 }
 0x6a3   : > { %v3364_v52 = vsub.f32 1.0, %v3363_v30 }
 0x6a5   : > { %v3365_v0 = vmul.f32 %v3557_v37, %v3364_v52 }
 0x6a7   : > { %v3366_v51 = vadd.f32 %v3557_v37, %v3365_v0 }
 0x6a9   : > { %v3370_v12 = vsel %vm3369_vm9, %v3557_v37, %v3366_v51 }
 0x6aa   : > { %v3375_v15 = vsel %vm3372_vm10, %v3374_v16, %v3370_v12 }
 0x6ab   : > { %3479 = vst.msk [vmem:[%s4735_s18 + $0x1] sm:$0x1] %vm4731_vm5, %v3375_v15 }
 0x6ac   : > { %3589 = shalt.err (!%p3586_p3)
}
 0x6ad   : > { %3484 = dma.vmem_to_hbm [thread:$0]  (%p3712_p5), %s3393_s22, 32, %s3395_s14, %s3380_s6  }
 0x6ae PF: > { %p3490_p4 = scmp.ge.s32.totalorder %s3624_s29, 2  ;;  %s3406_s23 = sand.u32 1, %s3612_s26  }
 0x6af   : > { %s3407_s18 = scalar_lea.sflag [#allocation4], %s3406_s23 }
 0x6b0   : > { %p3487_p7 = pnand %p3490_p4, %p3716_p6 }
 0x6b2   : > { %p3488_p8 = pneg %p3487_p7 }
 0x6b4   : > { %3607 = dma.done.wait (%p3488_p8), %s3407_s18, 32  }
 0x6b5   : > { %3609 = vsyncadd (%p3488_p8), %s3407_s18, 4294967264  ;;  %p18_p9 = scmp.ge.s32.totalorder %s3699_s8, 4   ;;  %s4965_s26 = smov %s3616_s27 }
 0x6b6   : > { %s4966_s27 = smov %s3620_s28  ;;  %s4967_s28 = smov %s3710_s11 }
 0x6b7   : > { %s4968_s29 = smov %s3699_s8  ;;  %20 = sbr.rel (!%p18_p9) target bundleno = 5 (0x5), region = 85 }
 0x6bc   :  { %3413 = vsyncpa [#allocation4], 1 }
 0x6bd   :  { %3415 = vsyncpa [#allocation4 + $0x1], 1 }

</bundles_post_ra>
